<compile_context>
chip_gen: v7x
topology: tpu7x:2x2x1
jax: 0.10.0
libtpu: 0.0.40
codegen_flags: <defaults>
</compile_context>

<pallas_src>
import functools

import jax
import jax.numpy as jnp
from jax import lax
from jax.experimental import pallas as pl
from jax.experimental.pallas import tpu as pltpu

LN_EPS = 1e-12  # BERT layer-norm epsilon


# ------------------------------ in-kernel helpers -----------------------------

def _ln(x, g, b):
    """LayerNorm over the last dim, f32 math."""
    mu = jnp.mean(x, axis=-1, keepdims=True)
    xc = x - mu
    var = jnp.mean(xc * xc, axis=-1, keepdims=True)
    return xc * lax.rsqrt(var + LN_EPS) * g + b


def _gelu(x):
    # TODO(synk): HF BERT uses exact erf-GELU; tanh approximation used here since
    # erf has no guaranteed Mosaic lowering.
    c = jnp.float32(0.7978845608028654)  # sqrt(2/pi)
    return 0.5 * x * (1.0 + jnp.tanh(c * (x + 0.044715 * x * x * x)))


def _dot_nt(a, b):
    """[M,K] x [N,K] -> [M,N]  (a @ b.T), bf16 operands, f32 accumulation on MXU."""
    return lax.dot_general(a, b, (((1,), (1,)), ((), ())),
                           preferred_element_type=jnp.float32)


# ------------------------------ fused encoder kernel --------------------------

def _encoder_kernel(x_ref, bias_ref, eg_ref, eb_ref,
                    wqkv_ref, bqkv_ref, wo_ref, bo_ref,
                    ln1g_ref, ln1b_ref, w1_ref, b1_ref,
                    w2_ref, b2_ref, ln2g_ref, ln2b_ref,
                    wp_ref, bp_ref,
                    pooled_ref,
                    h_scr,
                    *, H, Dh):
    """One (sequence b, layer l) grid step of the full encoder."""
    D = H * Dh
    l = pl.program_id(1)
    num_layers = pl.num_programs(1)

    # ---- l == 0: load this sequence's embeddings and apply the embeddings LN ----
    @pl.when(l == 0)
    def _():
        x0 = x_ref[0].astype(jnp.float32)                      # [S, D]
        h_scr[...] = _ln(x0, eg_ref[...], eb_ref[...])

    x = h_scr[...]                                             # [S, D] f32 (resident)
    xb = x.astype(jnp.bfloat16)

    # ---- fused QKV projection (bf16 MXU, f32 acc); scale pre-folded into Q ----
    qkv = jnp.dot(xb, wqkv_ref[0],
                  preferred_element_type=jnp.float32) + bqkv_ref[0]   # [S, 3D] f32
    qkv_b = qkv.astype(jnp.bfloat16)                                  # cast once

    bias = bias_ref[0]                                         # [1, S] f32 (0 / -1e9)
    wo = wo_ref[0]                                             # [D, D] bf16

    # ---- per-head attention; merge_heads fused into the output projection ----
    attn = None
    for h in range(H):
        qh = qkv_b[:, 0 * D + h * Dh: 0 * D + (h + 1) * Dh]   # [S, Dh] bf16
        kh = qkv_b[:, 1 * D + h * Dh: 1 * D + (h + 1) * Dh]
        vh = qkv_b[:, 2 * D + h * Dh: 2 * D + (h + 1) * Dh]
        s = _dot_nt(qh, kh) + bias                             # [S, S] f32
        m = jnp.max(s, axis=-1, keepdims=True)
        p = jnp.exp(s - m)
        p = p * pl.reciprocal(jnp.sum(p, axis=-1, keepdims=True), approx=True)
        ch = jnp.dot(p.astype(jnp.bfloat16), vh,
                     preferred_element_type=jnp.float32)       # [S, Dh] f32
        part = jnp.dot(ch.astype(jnp.bfloat16), wo[h * Dh:(h + 1) * Dh, :],
                       preferred_element_type=jnp.float32)     # [S, D] f32
        attn = part if attn is None else attn + part
    attn = attn + bo_ref[0]

    # ---- residual + LN1 ----
    h1 = _ln(x + attn, ln1g_ref[0], ln1b_ref[0])               # [S, D] f32

    # ---- FFN (bf16 matmuls, f32 accumulate) ----
    ffn = jnp.dot(h1.astype(jnp.bfloat16), w1_ref[0],
                  preferred_element_type=jnp.float32) + b1_ref[0]     # [S, F]
    ffn = _gelu(ffn)
    ffn = jnp.dot(ffn.astype(jnp.bfloat16), w2_ref[0],
                  preferred_element_type=jnp.float32) + b2_ref[0]     # [S, D]

    # ---- residual + LN2; keep activation resident for the next layer ----
    hn = _ln(h1 + ffn, ln2g_ref[0], ln2b_ref[0])
    h_scr[...] = hn

    # ---- last layer: pooler on the CLS row only ----
    @pl.when(l == num_layers - 1)
    def _():
        cls = hn[0:1, :]                                       # [1, D] f32
        pooled = jnp.tanh(jnp.dot(cls.astype(jnp.bfloat16), wp_ref[...],
                                  preferred_element_type=jnp.float32) + bp_ref[...])
        pooled_ref[0] = pooled.astype(pooled_ref.dtype)


# --------------------------- parameter construction ---------------------------

def init_params(key, *, vocab=100, max_pos=32, type_vocab=2, D=32, H=2, F=64, L=2):
    """Random BERT-like params, pre-packed for the kernel:
       * per-layer weights stacked along a leading [L] axis,
       * QKV fused into one [D, 3D] weight with 1/sqrt(Dh) folded into Q,
       * matmul weights stored in bf16 (f32 accumulation happens in-kernel)."""
    Dh = D // H
    scale = 1.0 / float(Dh) ** 0.5
    ks = iter(jax.random.split(key, 8 + 10 * L))

    def wf(shape):
        return 0.02 * jax.random.normal(next(ks), shape, jnp.float32)

    wqkv_l, bqkv_l, wo_l, bo_l = [], [], [], []
    ln1g_l, ln1b_l, w1_l, b1_l = [], [], [], []
    w2_l, b2_l, ln2g_l, ln2b_l = [], [], [], []
    for _ in range(L):
        wq, wk, wv = wf((D, D)), wf((D, D)), wf((D, D))
        bq = jnp.zeros((D,), jnp.float32)
        bk = jnp.zeros((D,), jnp.float32)
        bv = jnp.zeros((D,), jnp.float32)
        # fold 1/sqrt(Dh) into the Q columns (weight AND bias) at build time
        wqkv_l.append(jnp.concatenate([wq * scale, wk, wv], axis=1).astype(jnp.bfloat16))
        bqkv_l.append(jnp.concatenate([bq * scale, bk, bv]).reshape(1, 3 * D))
        wo_l.append(wf((D, D)).astype(jnp.bfloat16))
        bo_l.append(jnp.zeros((1, D), jnp.float32))
        ln1g_l.append(jnp.ones((1, D), jnp.float32))
        ln1b_l.append(jnp.zeros((1, D), jnp.float32))
        w1_l.append(wf((D, F)).astype(jnp.bfloat16))
        b1_l.append(jnp.zeros((1, F), jnp.float32))
        w2_l.append(wf((F, D)).astype(jnp.bfloat16))
        b2_l.append(jnp.zeros((1, D), jnp.float32))
        ln2g_l.append(jnp.ones((1, D), jnp.float32))
        ln2b_l.append(jnp.zeros((1, D), jnp.float32))

    return {
        "num_heads": H,
        "word_emb": wf((vocab, D)),
        "pos_emb": wf((max_pos, D)),
        "type_emb": wf((type_vocab, D)),
        "emb_ln_g": jnp.ones((1, D), jnp.float32),
        "emb_ln_b": jnp.zeros((1, D), jnp.float32),
        "wqkv": jnp.stack(wqkv_l),    # [L, D, 3D] bf16
        "bqkv": jnp.stack(bqkv_l),    # [L, 1, 3D] f32
        "wo":   jnp.stack(wo_l),      # [L, D, D]  bf16
        "bo":   jnp.stack(bo_l),      # [L, 1, D]  f32
        "ln1_g": jnp.stack(ln1g_l), "ln1_b": jnp.stack(ln1b_l),
        "w1":   jnp.stack(w1_l),      # [L, D, F]  bf16
        "b1":   jnp.stack(b1_l),      # [L, 1, F]  f32
        "w2":   jnp.stack(w2_l),      # [L, F, D]  bf16
        "b2":   jnp.stack(b2_l),      # [L, 1, D]  f32
        "ln2_g": jnp.stack(ln2g_l), "ln2_b": jnp.stack(ln2b_l),
        "wp": wf((D, D)).astype(jnp.bfloat16),   # pooler dense
        "bp": jnp.zeros((1, D), jnp.float32),
    }


# ------------------------------- forward pass ---------------------------------

def encoder_forward(params, input_ids, attention_mask, token_type_ids=None):
    """Returns pooler_output, shape [B, D] — mirrors Encoder.forward()."""
    B, S = input_ids.shape
    D = params["word_emb"].shape[1]
    H = params["num_heads"]
    Dh = D // H
    L = params["wqkv"].shape[0]
    F = params["w1"].shape[2]
    if token_type_ids is None:
        token_type_ids = jnp.zeros_like(input_ids)

    # Embedding gathers are glue (table lookups); the LayerNorm that follows is
    # fused into the l==0 iteration of the encoder kernel.
    emb = (params["word_emb"][input_ids]
           + params["pos_emb"][:S][None, :, :]
           + params["type_emb"][token_type_ids]).astype(jnp.float32)      # [B, S, D]

    # Additive key mask per sequence (tiny [B,1,S] row — nothing N^2 is built).
    mask_bias = jnp.where(attention_mask > 0, 0.0, -1e9).astype(jnp.float32)
    mask_bias = mask_bias.reshape(B, 1, S)

    kernel = functools.partial(_encoder_kernel, H=H, Dh=Dh)

    def per_layer(d1, d2):          # stacked [L, d1, d2] weight, indexed by l
        return pl.BlockSpec((1, d1, d2), lambda b, l: (l, 0, 0))

    def const2(d1, d2):             # shared [d1, d2] weight, resident
        return pl.BlockSpec((d1, d2), lambda b, l: (0, 0))

    grid_spec = pltpu.PrefetchScalarGridSpec(
        num_scalar_prefetch=0,
        grid=(B, L),                                   # b outer (parallel), l inner
        in_specs=[
            pl.BlockSpec((1, S, D), lambda b, l: (b, 0, 0)),   # embeddings
            pl.BlockSpec((1, 1, S), lambda b, l: (b, 0, 0)),   # additive mask row
            const2(1, D), const2(1, D),                        # embeddings LN
            per_layer(D, 3 * D), per_layer(1, 3 * D),          # wqkv, bqkv
            per_layer(D, D),     per_layer(1, D),              # wo, bo
            per_layer(1, D),     per_layer(1, D),              # ln1 g, b
            per_layer(D, F),     per_layer(1, F),              # w1, b1
            per_layer(F, D),     per_layer(1, D),              # w2, b2
            per_layer(1, D),     per_layer(1, D),              # ln2 g, b
            const2(D, D),        const2(1, D),                 # pooler wp, bp
        ],
        out_specs=pl.BlockSpec((1, 1, D), lambda b, l: (b, 0, 0)),
        scratch_shapes=[pltpu.VMEM((S, D), jnp.float32)],      # resident activation
    )

    pooled = pl.pallas_call(
        kernel,
        grid_spec=grid_spec,
        out_shape=jax.ShapeDtypeStruct((B, 1, D), jnp.float32),
        compiler_params=pltpu.CompilerParams(
            dimension_semantics=("parallel", "arbitrary"),
            vmem_limit_bytes=64 * 1024 * 1024),
    )(emb, mask_bias,
      params["emb_ln_g"], params["emb_ln_b"],
      params["wqkv"], params["bqkv"],
      params["wo"], params["bo"],
      params["ln1_g"], params["ln1_b"],
      params["w1"], params["b1"],
      params["w2"], params["b2"],
      params["ln2_g"], params["ln2_b"],
      params["wp"], params["bp"])

    return pooled.reshape(B, D)


# ----------------------------------- demo -------------------------------------

if __name__ == "__main__":
    key = jax.random.PRNGKey(0)
    k_param, k_ids = jax.random.split(key)

    B, S, D, H, F, L, VOCAB = 2, 8, 32, 2, 64, 2, 100
    params = init_params(k_param, vocab=VOCAB, max_pos=32, type_vocab=2,
                         D=D, H=H, F=F, L=L)

    input_ids = jax.random.randint(k_ids, (B, S), 0, VOCAB, dtype=jnp.int32)
    attention_mask = jnp.array([[1, 1, 1, 1, 1, 1, 0, 0],
                                [1, 1, 1, 1, 0, 0, 0, 0]], dtype=jnp.int32)
    token_type_ids = jnp.zeros((B, S), dtype=jnp.int32)

    fwd = jax.jit(lambda ids, mask, tt: encoder_forward(params, ids, mask, tt))
    pooler_output = jax.block_until_ready(fwd(input_ids, attention_mask, token_type_ids))

    assert pooler_output.shape == (B, D)
    assert bool(jnp.all(jnp.isfinite(pooler_output)))
    print("KERNEL_OK")
</pallas_src>

<mosaic_0001>
module attributes {stable_mosaic.version = 11 : i64} {
  func.func @_encoder_kernel(%arg0: i32, %arg1: i32, %arg2: memref<1x8x32xf32, #tpu.memory_space<vmem>>, %arg3: memref<1x1x8xf32, #tpu.memory_space<vmem>>, %arg4: memref<1x32xf32, #tpu.memory_space<vmem>>, %arg5: memref<1x32xf32, #tpu.memory_space<vmem>>, %arg6: memref<1x32x96xbf16, #tpu.memory_space<vmem>>, %arg7: memref<1x1x96xf32, #tpu.memory_space<vmem>>, %arg8: memref<1x32x32xbf16, #tpu.memory_space<vmem>>, %arg9: memref<1x1x32xf32, #tpu.memory_space<vmem>>, %arg10: memref<1x1x32xf32, #tpu.memory_space<vmem>>, %arg11: memref<1x1x32xf32, #tpu.memory_space<vmem>>, %arg12: memref<1x32x64xbf16, #tpu.memory_space<vmem>>, %arg13: memref<1x1x64xf32, #tpu.memory_space<vmem>>, %arg14: memref<1x64x32xbf16, #tpu.memory_space<vmem>>, %arg15: memref<1x1x32xf32, #tpu.memory_space<vmem>>, %arg16: memref<1x1x32xf32, #tpu.memory_space<vmem>>, %arg17: memref<1x1x32xf32, #tpu.memory_space<vmem>>, %arg18: memref<32x32xbf16, #tpu.memory_space<vmem>>, %arg19: memref<1x32xf32, #tpu.memory_space<vmem>>, %arg20: memref<1x1x32xf32, #tpu.memory_space<vmem>>, %arg21: memref<8x32xf32, #tpu.memory_space<vmem>>) attributes {dimension_semantics = [#tpu.dimension_semantics<parallel>, #tpu.dimension_semantics<arbitrary>], iteration_bounds = array<i64: 2, 2>, scalar_prefetch = 0 : i64, scratch_operands = 1 : i64, tpu.core_type = #tpu.core_type<tc>, window_params = [{transform_indices = @transform_0, window_bounds = array<i64: 1, 8, 32>}, {transform_indices = @transform_1, window_bounds = array<i64: 1, 1, 8>}, {pipeline_mode = #tpu.pipeline_mode<synchronous>, transform_indices = @transform_2, window_bounds = array<i64: 1, 32>}, {pipeline_mode = #tpu.pipeline_mode<synchronous>, transform_indices = @transform_3, window_bounds = array<i64: 1, 32>}, {transform_indices = @transform_4, window_bounds = array<i64: 1, 32, 96>}, {transform_indices = @transform_5, window_bounds = array<i64: 1, 1, 96>}, {transform_indices = @transform_6, window_bounds = array<i64: 1, 32, 32>}, {transform_indices = @transform_7, window_bounds = array<i64: 1, 1, 32>}, {transform_indices = @transform_8, window_bounds = array<i64: 1, 1, 32>}, {transform_indices = @transform_9, window_bounds = array<i64: 1, 1, 32>}, {transform_indices = @transform_10, window_bounds = array<i64: 1, 32, 64>}, {transform_indices = @transform_11, window_bounds = array<i64: 1, 1, 64>}, {transform_indices = @transform_12, window_bounds = array<i64: 1, 64, 32>}, {transform_indices = @transform_13, window_bounds = array<i64: 1, 1, 32>}, {transform_indices = @transform_14, window_bounds = array<i64: 1, 1, 32>}, {transform_indices = @transform_15, window_bounds = array<i64: 1, 1, 32>}, {pipeline_mode = #tpu.pipeline_mode<synchronous>, transform_indices = @transform_16, window_bounds = array<i64: 32, 32>}, {pipeline_mode = #tpu.pipeline_mode<synchronous>, transform_indices = @transform_17, window_bounds = array<i64: 1, 32>}, {transform_indices = @transform_18, window_bounds = array<i64: 1, 1, 32>}]} {
    %c0_i32 = arith.constant 0 : i32
    %0 = arith.cmpi eq, %arg1, %c0_i32 : i32
    %1 = arith.extui %0 : i1 to i32
    %c0_i32_0 = arith.constant 0 : i32
    %2 = arith.cmpi ne, %1, %c0_i32_0 : i32
    scf.if %2 {
      %c0_70 = arith.constant 0 : index
      %c0_71 = arith.constant 0 : index
      %c0_72 = arith.constant 0 : index
      %147 = vector.load %arg2[%c0_70, %c0_71, %c0_72] : memref<1x8x32xf32, #tpu.memory_space<vmem>>, vector<1x8x32xf32>
      %148 = vector.shape_cast %147 : vector<1x8x32xf32> to vector<8x32xf32>
      %c0_73 = arith.constant 0 : index
      %c0_74 = arith.constant 0 : index
      %149 = vector.load %arg4[%c0_73, %c0_74] : memref<1x32xf32, #tpu.memory_space<vmem>>, vector<1x32xf32>
      %c0_75 = arith.constant 0 : index
      %c0_76 = arith.constant 0 : index
      %150 = vector.load %arg5[%c0_75, %c0_76] : memref<1x32xf32, #tpu.memory_space<vmem>>, vector<1x32xf32>
      %cst_77 = arith.constant dense<0.000000e+00> : vector<8xf32>
      %151 = vector.multi_reduction <add>, %148, %cst_77 [1] : vector<8x32xf32> to vector<8xf32>
      %152 = vector.shape_cast %151 : vector<8xf32> to vector<8x1xf32>
      %cst_78 = arith.constant 3.200000e+01 : f32
      %153 = vector.broadcast %cst_78 : f32 to vector<8x1xf32>
      %154 = arith.divf %152, %153 : vector<8x1xf32>
      %155 = vector.broadcast %154 : vector<8x1xf32> to vector<8x32xf32>
      %156 = arith.subf %148, %155 : vector<8x32xf32>
      %157 = arith.mulf %156, %156 : vector<8x32xf32>
      %cst_79 = arith.constant dense<0.000000e+00> : vector<8xf32>
      %158 = vector.multi_reduction <add>, %157, %cst_79 [1] : vector<8x32xf32> to vector<8xf32>
      %159 = vector.shape_cast %158 : vector<8xf32> to vector<8x1xf32>
      %cst_80 = arith.constant 3.200000e+01 : f32
      %160 = vector.broadcast %cst_80 : f32 to vector<8x1xf32>
      %161 = arith.divf %159, %160 : vector<8x1xf32>
      %cst_81 = arith.constant 9.99999996E-13 : f32
      %162 = vector.broadcast %cst_81 : f32 to vector<8x1xf32>
      %163 = arith.addf %161, %162 : vector<8x1xf32>
      %164 = math.rsqrt %163 : vector<8x1xf32>
      %165 = vector.broadcast %164 : vector<8x1xf32> to vector<8x32xf32>
      %166 = arith.mulf %156, %165 : vector<8x32xf32>
      %167 = vector.broadcast %149 : vector<1x32xf32> to vector<8x32xf32>
      %168 = arith.mulf %166, %167 : vector<8x32xf32>
      %169 = vector.broadcast %150 : vector<1x32xf32> to vector<8x32xf32>
      %170 = arith.addf %168, %169 : vector<8x32xf32>
      %c0_82 = arith.constant 0 : index
      %c0_83 = arith.constant 0 : index
      %171 = vector.load %arg21[%c0_82, %c0_83] : memref<8x32xf32, #tpu.memory_space<vmem>>, vector<8x32xf32>
      tpu.vector_store %arg21[%c0_82, %c0_83], %170 {strides = array<i32>} : memref<8x32xf32, #tpu.memory_space<vmem>>, vector<8x32xf32>,
    } else {
    }
    %c0 = arith.constant 0 : index
    %c0_1 = arith.constant 0 : index
    %3 = vector.load %arg21[%c0, %c0_1] : memref<8x32xf32, #tpu.memory_space<vmem>>, vector<8x32xf32>
    %4 = arith.truncf %3 : vector<8x32xf32> to vector<8x32xbf16>
    %c0_2 = arith.constant 0 : index
    %c0_3 = arith.constant 0 : index
    %c0_4 = arith.constant 0 : index
    %5 = vector.load %arg6[%c0_2, %c0_3, %c0_4] : memref<1x32x96xbf16, #tpu.memory_space<vmem>>, vector<1x32x96xbf16>
    %6 = vector.shape_cast %5 : vector<1x32x96xbf16> to vector<32x96xbf16>
    %cst = arith.constant dense<0.000000e+00> : vector<8x96xf32>
    %7 = tpu.matmul %4, %6, %cst {dimension_numbers = #tpu.dot_dimension_numbers<[1], [0], [0], [1], [0, 0, 1, 1], [], []>} : vector<8x32xbf16>, vector<32x96xbf16>, vector<8x96xf32> -> vector<8x96xf32>
    %c0_5 = arith.constant 0 : index
    %c0_6 = arith.constant 0 : index
    %c0_7 = arith.constant 0 : index
    %8 = vector.load %arg7[%c0_5, %c0_6, %c0_7] : memref<1x1x96xf32, #tpu.memory_space<vmem>>, vector<1x1x96xf32>
    %9 = vector.shape_cast %8 : vector<1x1x96xf32> to vector<1x96xf32>
    %10 = vector.broadcast %9 : vector<1x96xf32> to vector<8x96xf32>
    %11 = arith.addf %7, %10 : vector<8x96xf32>
    %12 = arith.truncf %11 : vector<8x96xf32> to vector<8x96xbf16>
    %c0_8 = arith.constant 0 : index
    %c0_9 = arith.constant 0 : index
    %c0_10 = arith.constant 0 : index
    %13 = vector.load %arg3[%c0_8, %c0_9, %c0_10] : memref<1x1x8xf32, #tpu.memory_space<vmem>>, vector<1x1x8xf32>
    %14 = vector.shape_cast %13 : vector<1x1x8xf32> to vector<1x8xf32>
    %c0_11 = arith.constant 0 : index
    %c0_12 = arith.constant 0 : index
    %c0_13 = arith.constant 0 : index
    %15 = vector.load %arg8[%c0_11, %c0_12, %c0_13] : memref<1x32x32xbf16, #tpu.memory_space<vmem>>, vector<1x32x32xbf16>
    %16 = vector.shape_cast %15 : vector<1x32x32xbf16> to vector<32x32xbf16>
    %17 = vector.extract_strided_slice %12 {offsets = [0, 0], sizes = [8, 16], strides = [1, 1]} : vector<8x96xbf16> to vector<8x16xbf16>
    %18 = vector.extract_strided_slice %12 {offsets = [0, 32], sizes = [8, 16], strides = [1, 1]} : vector<8x96xbf16> to vector<8x16xbf16>
    %19 = vector.extract_strided_slice %12 {offsets = [0, 64], sizes = [8, 16], strides = [1, 1]} : vector<8x96xbf16> to vector<8x16xbf16>
    %cst_14 = arith.constant dense<0.000000e+00> : vector<8x8xf32>
    %20 = tpu.matmul %17, %18, %cst_14 {dimension_numbers = #tpu.dot_dimension_numbers<[1], [1], [0], [0], [0, 0, 1, 0], [], []>} : vector<8x16xbf16>, vector<8x16xbf16>, vector<8x8xf32> -> vector<8x8xf32>
    %21 = vector.broadcast %14 : vector<1x8xf32> to vector<8x8xf32>
    %22 = arith.addf %20, %21 : vector<8x8xf32>
    %cst_15 = arith.constant dense<0xFF800000> : vector<8xf32>
    %23 = vector.multi_reduction <maximumf>, %22, %cst_15 [1] : vector<8x8xf32> to vector<8xf32>
    %24 = vector.shape_cast %23 : vector<8xf32> to vector<8x1xf32>
    %25 = vector.broadcast %24 : vector<8x1xf32> to vector<8x8xf32>
    %26 = arith.subf %22, %25 : vector<8x8xf32>
    %27 = math.exp %26 : vector<8x8xf32>
    %cst_16 = arith.constant dense<0.000000e+00> : vector<8xf32>
    %28 = vector.multi_reduction <add>, %27, %cst_16 [1] : vector<8x8xf32> to vector<8xf32>
    %29 = vector.shape_cast %28 : vector<8xf32> to vector<8x1xf32>
    %30 = tpu.reciprocal %29 {approx = true} : vector<8x1xf32> -> vector<8x1xf32>
    %31 = vector.broadcast %30 : vector<8x1xf32> to vector<8x8xf32>
    %32 = arith.mulf %27, %31 : vector<8x8xf32>
    %33 = arith.truncf %32 : vector<8x8xf32> to vector<8x8xbf16>
    %cst_17 = arith.constant dense<0.000000e+00> : vector<8x16xf32>
    %34 = tpu.matmul %33, %19, %cst_17 {dimension_numbers = #tpu.dot_dimension_numbers<[1], [0], [0], [1], [0, 0, 1, 1], [], []>} : vector<8x8xbf16>, vector<8x16xbf16>, vector<8x16xf32> -> vector<8x16xf32>
    %35 = arith.truncf %34 : vector<8x16xf32> to vector<8x16xbf16>
    %36 = vector.extract_strided_slice %16 {offsets = [0, 0], sizes = [16, 32], strides = [1, 1]} : vector<32x32xbf16> to vector<16x32xbf16>
    %cst_18 = arith.constant dense<0.000000e+00> : vector<8x32xf32>
    %37 = tpu.matmul %35, %36, %cst_18 {dimension_numbers = #tpu.dot_dimension_numbers<[1], [0], [0], [1], [0, 0, 1, 1], [], []>} : vector<8x16xbf16>, vector<16x32xbf16>, vector<8x32xf32> -> vector<8x32xf32>
    %38 = vector.extract_strided_slice %12 {offsets = [0, 16], sizes = [8, 16], strides = [1, 1]} : vector<8x96xbf16> to vector<8x16xbf16>
    %39 = vector.extract_strided_slice %12 {offsets = [0, 48], sizes = [8, 16], strides = [1, 1]} : vector<8x96xbf16> to vector<8x16xbf16>
    %40 = vector.extract_strided_slice %12 {offsets = [0, 80], sizes = [8, 16], strides = [1, 1]} : vector<8x96xbf16> to vector<8x16xbf16>
    %cst_19 = arith.constant dense<0.000000e+00> : vector<8x8xf32>
    %41 = tpu.matmul %38, %39, %cst_19 {dimension_numbers = #tpu.dot_dimension_numbers<[1], [1], [0], [0], [0, 0, 1, 0], [], []>} : vector<8x16xbf16>, vector<8x16xbf16>, vector<8x8xf32> -> vector<8x8xf32>
    %42 = vector.broadcast %14 : vector<1x8xf32> to vector<8x8xf32>
    %43 = arith.addf %41, %42 : vector<8x8xf32>
    %cst_20 = arith.constant dense<0xFF800000> : vector<8xf32>
    %44 = vector.multi_reduction <maximumf>, %43, %cst_20 [1] : vector<8x8xf32> to vector<8xf32>
    %45 = vector.shape_cast %44 : vector<8xf32> to vector<8x1xf32>
    %46 = vector.broadcast %45 : vector<8x1xf32> to vector<8x8xf32>
    %47 = arith.subf %43, %46 : vector<8x8xf32>
    %48 = math.exp %47 : vector<8x8xf32>
    %cst_21 = arith.constant dense<0.000000e+00> : vector<8xf32>
    %49 = vector.multi_reduction <add>, %48, %cst_21 [1] : vector<8x8xf32> to vector<8xf32>
    %50 = vector.shape_cast %49 : vector<8xf32> to vector<8x1xf32>
    %51 = tpu.reciprocal %50 {approx = true} : vector<8x1xf32> -> vector<8x1xf32>
    %52 = vector.broadcast %51 : vector<8x1xf32> to vector<8x8xf32>
    %53 = arith.mulf %48, %52 : vector<8x8xf32>
    %54 = arith.truncf %53 : vector<8x8xf32> to vector<8x8xbf16>
    %cst_22 = arith.constant dense<0.000000e+00> : vector<8x16xf32>
    %55 = tpu.matmul %54, %40, %cst_22 {dimension_numbers = #tpu.dot_dimension_numbers<[1], [0], [0], [1], [0, 0, 1, 1], [], []>} : vector<8x8xbf16>, vector<8x16xbf16>, vector<8x16xf32> -> vector<8x16xf32>
    %56 = arith.truncf %55 : vector<8x16xf32> to vector<8x16xbf16>
    %57 = vector.extract_strided_slice %16 {offsets = [16, 0], sizes = [16, 32], strides = [1, 1]} : vector<32x32xbf16> to vector<16x32xbf16>
    %cst_23 = arith.constant dense<0.000000e+00> : vector<8x32xf32>
    %58 = tpu.matmul %56, %57, %cst_23 {dimension_numbers = #tpu.dot_dimension_numbers<[1], [0], [0], [1], [0, 0, 1, 1], [], []>} : vector<8x16xbf16>, vector<16x32xbf16>, vector<8x32xf32> -> vector<8x32xf32>
    %59 = arith.addf %37, %58 : vector<8x32xf32>
    %c0_24 = arith.constant 0 : index
    %c0_25 = arith.constant 0 : index
    %c0_26 = arith.constant 0 : index
    %60 = vector.load %arg9[%c0_24, %c0_25, %c0_26] : memref<1x1x32xf32, #tpu.memory_space<vmem>>, vector<1x1x32xf32>
    %61 = vector.shape_cast %60 : vector<1x1x32xf32> to vector<1x32xf32>
    %62 = vector.broadcast %61 : vector<1x32xf32> to vector<8x32xf32>
    %63 = arith.addf %59, %62 : vector<8x32xf32>
    %64 = arith.addf %3, %63 : vector<8x32xf32>
    %c0_27 = arith.constant 0 : index
    %c0_28 = arith.constant 0 : index
    %c0_29 = arith.constant 0 : index
    %65 = vector.load %arg10[%c0_27, %c0_28, %c0_29] : memref<1x1x32xf32, #tpu.memory_space<vmem>>, vector<1x1x32xf32>
    %66 = vector.shape_cast %65 : vector<1x1x32xf32> to vector<1x32xf32>
    %c0_30 = arith.constant 0 : index
    %c0_31 = arith.constant 0 : index
    %c0_32 = arith.constant 0 : index
    %67 = vector.load %arg11[%c0_30, %c0_31, %c0_32] : memref<1x1x32xf32, #tpu.memory_space<vmem>>, vector<1x1x32xf32>
    %68 = vector.shape_cast %67 : vector<1x1x32xf32> to vector<1x32xf32>
    %cst_33 = arith.constant dense<0.000000e+00> : vector<8xf32>
    %69 = vector.multi_reduction <add>, %64, %cst_33 [1] : vector<8x32xf32> to vector<8xf32>
    %70 = vector.shape_cast %69 : vector<8xf32> to vector<8x1xf32>
    %cst_34 = arith.constant 3.200000e+01 : f32
    %71 = vector.broadcast %cst_34 : f32 to vector<8x1xf32>
    %72 = arith.divf %70, %71 : vector<8x1xf32>
    %73 = vector.broadcast %72 : vector<8x1xf32> to vector<8x32xf32>
    %74 = arith.subf %64, %73 : vector<8x32xf32>
    %75 = arith.mulf %74, %74 : vector<8x32xf32>
    %cst_35 = arith.constant dense<0.000000e+00> : vector<8xf32>
    %76 = vector.multi_reduction <add>, %75, %cst_35 [1] : vector<8x32xf32> to vector<8xf32>
    %77 = vector.shape_cast %76 : vector<8xf32> to vector<8x1xf32>
    %cst_36 = arith.constant 3.200000e+01 : f32
    %78 = vector.broadcast %cst_36 : f32 to vector<8x1xf32>
    %79 = arith.divf %77, %78 : vector<8x1xf32>
    %cst_37 = arith.constant 9.99999996E-13 : f32
    %80 = vector.broadcast %cst_37 : f32 to vector<8x1xf32>
    %81 = arith.addf %79, %80 : vector<8x1xf32>
    %82 = math.rsqrt %81 : vector<8x1xf32>
    %83 = vector.broadcast %82 : vector<8x1xf32> to vector<8x32xf32>
    %84 = arith.mulf %74, %83 : vector<8x32xf32>
    %85 = vector.broadcast %66 : vector<1x32xf32> to vector<8x32xf32>
    %86 = arith.mulf %84, %85 : vector<8x32xf32>
    %87 = vector.broadcast %68 : vector<1x32xf32> to vector<8x32xf32>
    %88 = arith.addf %86, %87 : vector<8x32xf32>
    %89 = arith.truncf %88 : vector<8x32xf32> to vector<8x32xbf16>
    %c0_38 = arith.constant 0 : index
    %c0_39 = arith.constant 0 : index
    %c0_40 = arith.constant 0 : index
    %90 = vector.load %arg12[%c0_38, %c0_39, %c0_40] : memref<1x32x64xbf16, #tpu.memory_space<vmem>>, vector<1x32x64xbf16>
    %91 = vector.shape_cast %90 : vector<1x32x64xbf16> to vector<32x64xbf16>
    %cst_41 = arith.constant dense<0.000000e+00> : vector<8x64xf32>
    %92 = tpu.matmul %89, %91, %cst_41 {dimension_numbers = #tpu.dot_dimension_numbers<[1], [0], [0], [1], [0, 0, 1, 1], [], []>} : vector<8x32xbf16>, vector<32x64xbf16>, vector<8x64xf32> -> vector<8x64xf32>
    %c0_42 = arith.constant 0 : index
    %c0_43 = arith.constant 0 : index
    %c0_44 = arith.constant 0 : index
    %93 = vector.load %arg13[%c0_42, %c0_43, %c0_44] : memref<1x1x64xf32, #tpu.memory_space<vmem>>, vector<1x1x64xf32>
    %94 = vector.shape_cast %93 : vector<1x1x64xf32> to vector<1x64xf32>
    %95 = vector.broadcast %94 : vector<1x64xf32> to vector<8x64xf32>
    %96 = arith.addf %92, %95 : vector<8x64xf32>
    %cst_45 = arith.constant 5.000000e-01 : f32
    %97 = vector.broadcast %cst_45 : f32 to vector<8x64xf32>
    %98 = arith.mulf %97, %96 : vector<8x64xf32>
    %cst_46 = arith.constant 4.471500e-02 : f32
    %99 = vector.broadcast %cst_46 : f32 to vector<8x64xf32>
    %100 = arith.mulf %99, %96 : vector<8x64xf32>
    %101 = arith.mulf %100, %96 : vector<8x64xf32>
    %102 = arith.mulf %101, %96 : vector<8x64xf32>
    %103 = arith.addf %96, %102 : vector<8x64xf32>
    %cst_47 = arith.constant 0.797884583 : f32
    %104 = vector.broadcast %cst_47 : f32 to vector<8x64xf32>
    %105 = arith.mulf %104, %103 : vector<8x64xf32>
    %106 = math.tanh %105 : vector<8x64xf32>
    %cst_48 = arith.constant 1.000000e+00 : f32
    %107 = vector.broadcast %cst_48 : f32 to vector<8x64xf32>
    %108 = arith.addf %107, %106 : vector<8x64xf32>
    %109 = arith.mulf %98, %108 : vector<8x64xf32>
    %110 = arith.truncf %109 : vector<8x64xf32> to vector<8x64xbf16>
    %c0_49 = arith.constant 0 : index
    %c0_50 = arith.constant 0 : index
    %c0_51 = arith.constant 0 : index
    %111 = vector.load %arg14[%c0_49, %c0_50, %c0_51] : memref<1x64x32xbf16, #tpu.memory_space<vmem>>, vector<1x64x32xbf16>
    %112 = vector.shape_cast %111 : vector<1x64x32xbf16> to vector<64x32xbf16>
    %cst_52 = arith.constant dense<0.000000e+00> : vector<8x32xf32>
    %113 = tpu.matmul %110, %112, %cst_52 {dimension_numbers = #tpu.dot_dimension_numbers<[1], [0], [0], [1], [0, 0, 1, 1], [], []>} : vector<8x64xbf16>, vector<64x32xbf16>, vector<8x32xf32> -> vector<8x32xf32>
    %c0_53 = arith.constant 0 : index
    %c0_54 = arith.constant 0 : index
    %c0_55 = arith.constant 0 : index
    %114 = vector.load %arg15[%c0_53, %c0_54, %c0_55] : memref<1x1x32xf32, #tpu.memory_space<vmem>>, vector<1x1x32xf32>
    %115 = vector.shape_cast %114 : vector<1x1x32xf32> to vector<1x32xf32>
    %116 = vector.broadcast %115 : vector<1x32xf32> to vector<8x32xf32>
    %117 = arith.addf %113, %116 : vector<8x32xf32>
    %118 = arith.addf %88, %117 : vector<8x32xf32>
    %c0_56 = arith.constant 0 : index
    %c0_57 = arith.constant 0 : index
    %c0_58 = arith.constant 0 : index
    %119 = vector.load %arg16[%c0_56, %c0_57, %c0_58] : memref<1x1x32xf32, #tpu.memory_space<vmem>>, vector<1x1x32xf32>
    %120 = vector.shape_cast %119 : vector<1x1x32xf32> to vector<1x32xf32>
    %c0_59 = arith.constant 0 : index
    %c0_60 = arith.constant 0 : index
    %c0_61 = arith.constant 0 : index
    %121 = vector.load %arg17[%c0_59, %c0_60, %c0_61] : memref<1x1x32xf32, #tpu.memory_space<vmem>>, vector<1x1x32xf32>
    %122 = vector.shape_cast %121 : vector<1x1x32xf32> to vector<1x32xf32>
    %cst_62 = arith.constant dense<0.000000e+00> : vector<8xf32>
    %123 = vector.multi_reduction <add>, %118, %cst_62 [1] : vector<8x32xf32> to vector<8xf32>
    %124 = vector.shape_cast %123 : vector<8xf32> to vector<8x1xf32>
    %cst_63 = arith.constant 3.200000e+01 : f32
    %125 = vector.broadcast %cst_63 : f32 to vector<8x1xf32>
    %126 = arith.divf %124, %125 : vector<8x1xf32>
    %127 = vector.broadcast %126 : vector<8x1xf32> to vector<8x32xf32>
    %128 = arith.subf %118, %127 : vector<8x32xf32>
    %129 = arith.mulf %128, %128 : vector<8x32xf32>
    %cst_64 = arith.constant dense<0.000000e+00> : vector<8xf32>
    %130 = vector.multi_reduction <add>, %129, %cst_64 [1] : vector<8x32xf32> to vector<8xf32>
    %131 = vector.shape_cast %130 : vector<8xf32> to vector<8x1xf32>
    %cst_65 = arith.constant 3.200000e+01 : f32
    %132 = vector.broadcast %cst_65 : f32 to vector<8x1xf32>
    %133 = arith.divf %131, %132 : vector<8x1xf32>
    %cst_66 = arith.constant 9.99999996E-13 : f32
    %134 = vector.broadcast %cst_66 : f32 to vector<8x1xf32>
    %135 = arith.addf %133, %134 : vector<8x1xf32>
    %136 = math.rsqrt %135 : vector<8x1xf32>
    %137 = vector.broadcast %136 : vector<8x1xf32> to vector<8x32xf32>
    %138 = arith.mulf %128, %137 : vector<8x32xf32>
    %139 = vector.broadcast %120 : vector<1x32xf32> to vector<8x32xf32>
    %140 = arith.mulf %138, %139 : vector<8x32xf32>
    %141 = vector.broadcast %122 : vector<1x32xf32> to vector<8x32xf32>
    %142 = arith.addf %140, %141 : vector<8x32xf32>
    %c0_67 = arith.constant 0 : index
    %c0_68 = arith.constant 0 : index
    %143 = vector.load %arg21[%c0_67, %c0_68] : memref<8x32xf32, #tpu.memory_space<vmem>>, vector<8x32xf32>
    tpu.vector_store %arg21[%c0_67, %c0_68], %142 {strides = array<i32>} : memref<8x32xf32, #tpu.memory_space<vmem>>, vector<8x32xf32>,
    %c1_i32 = arith.constant 1 : i32
    %144 = arith.cmpi eq, %arg1, %c1_i32 : i32
    %145 = arith.extui %144 : i1 to i32
    %c0_i32_69 = arith.constant 0 : i32
    %146 = arith.cmpi ne, %145, %c0_i32_69 : i32
    scf.if %146 {
      %147 = vector.extract_strided_slice %142 {offsets = [0, 0], sizes = [1, 32], strides = [1, 1]} : vector<8x32xf32> to vector<1x32xf32>
      %148 = arith.truncf %147 : vector<1x32xf32> to vector<1x32xbf16>
      %c0_70 = arith.constant 0 : index
      %c0_71 = arith.constant 0 : index
      %149 = vector.load %arg18[%c0_70, %c0_71] : memref<32x32xbf16, #tpu.memory_space<vmem>>, vector<32x32xbf16>
      %cst_72 = arith.constant dense<0.000000e+00> : vector<1x32xf32>
      %150 = tpu.matmul %148, %149, %cst_72 {dimension_numbers = #tpu.dot_dimension_numbers<[1], [0], [0], [1], [0, 0, 1, 1], [], []>} : vector<1x32xbf16>, vector<32x32xbf16>, vector<1x32xf32> -> vector<1x32xf32>
      %c0_73 = arith.constant 0 : index
      %c0_74 = arith.constant 0 : index
      %151 = vector.load %arg19[%c0_73, %c0_74] : memref<1x32xf32, #tpu.memory_space<vmem>>, vector<1x32xf32>
      %152 = arith.addf %150, %151 : vector<1x32xf32>
      %153 = math.tanh %152 : vector<1x32xf32>
      %c0_75 = arith.constant 0 : index
      %c0_76 = arith.constant 0 : index
      %c0_77 = arith.constant 0 : index
      %154 = vector.load %arg20[%c0_75, %c0_76, %c0_77] : memref<1x1x32xf32, #tpu.memory_space<vmem>>, vector<1x1x32xf32>
      %155 = vector.shape_cast %154 : vector<1x1x32xf32> to vector<1x32xf32>
      %156 = vector.shape_cast %153 : vector<1x32xf32> to vector<1x1x32xf32>
      tpu.vector_store %arg20[%c0_75, %c0_76, %c0_77], %156 {strides = array<i32>} : memref<1x1x32xf32, #tpu.memory_space<vmem>>, vector<1x1x32xf32>,
    } else {
    }
    return
  }
  func.func @transform_0(%arg0: i32, %arg1: i32) -> (i32, i32, i32) {
    %c0_i32 = arith.constant 0 : i32
    %c0_i32_0 = arith.constant 0 : i32
    %c0_i32_1 = arith.constant 0 : i32
    return %arg0, %c0_i32, %c0_i32_0 : i32, i32, i32
  }
  func.func @transform_1(%arg0: i32, %arg1: i32) -> (i32, i32, i32) {
    %c0_i32 = arith.constant 0 : i32
    %c0_i32_0 = arith.constant 0 : i32
    %c0_i32_1 = arith.constant 0 : i32
    return %arg0, %c0_i32, %c0_i32_0 : i32, i32, i32
  }
  func.func @transform_2(%arg0: i32, %arg1: i32) -> (i32, i32) {
    %c0_i32 = arith.constant 0 : i32
    %c0_i32_0 = arith.constant 0 : i32
    %c0_i32_1 = arith.constant 0 : i32
    return %c0_i32, %c0_i32_0 : i32, i32
  }
  func.func @transform_3(%arg0: i32, %arg1: i32) -> (i32, i32) {
    %c0_i32 = arith.constant 0 : i32
    %c0_i32_0 = arith.constant 0 : i32
    %c0_i32_1 = arith.constant 0 : i32
    return %c0_i32, %c0_i32_0 : i32, i32
  }
  func.func @transform_4(%arg0: i32, %arg1: i32) -> (i32, i32, i32) {
    %c0_i32 = arith.constant 0 : i32
    %c0_i32_0 = arith.constant 0 : i32
    %c0_i32_1 = arith.constant 0 : i32
    return %arg1, %c0_i32, %c0_i32_0 : i32, i32, i32
  }
  func.func @transform_5(%arg0: i32, %arg1: i32) -> (i32, i32, i32) {
    %c0_i32 = arith.constant 0 : i32
    %c0_i32_0 = arith.constant 0 : i32
    %c0_i32_1 = arith.constant 0 : i32
    return %arg1, %c0_i32, %c0_i32_0 : i32, i32, i32
  }
  func.func @transform_6(%arg0: i32, %arg1: i32) -> (i32, i32, i32) {
    %c0_i32 = arith.constant 0 : i32
    %c0_i32_0 = arith.constant 0 : i32
    %c0_i32_1 = arith.constant 0 : i32
    return %arg1, %c0_i32, %c0_i32_0 : i32, i32, i32
  }
  func.func @transform_7(%arg0: i32, %arg1: i32) -> (i32, i32, i32) {
    %c0_i32 = arith.constant 0 : i32
    %c0_i32_0 = arith.constant 0 : i32
    %c0_i32_1 = arith.constant 0 : i32
    return %arg1, %c0_i32, %c0_i32_0 : i32, i32, i32
  }
  func.func @transform_8(%arg0: i32, %arg1: i32) -> (i32, i32, i32) {
    %c0_i32 = arith.constant 0 : i32
    %c0_i32_0 = arith.constant 0 : i32
    %c0_i32_1 = arith.constant 0 : i32
    return %arg1, %c0_i32, %c0_i32_0 : i32, i32, i32
  }
  func.func @transform_9(%arg0: i32, %arg1: i32) -> (i32, i32, i32) {
    %c0_i32 = arith.constant 0 : i32
    %c0_i32_0 = arith.constant 0 : i32
    %c0_i32_1 = arith.constant 0 : i32
    return %arg1, %c0_i32, %c0_i32_0 : i32, i32, i32
  }
  func.func @transform_10(%arg0: i32, %arg1: i32) -> (i32, i32, i32) {
    %c0_i32 = arith.constant 0 : i32
    %c0_i32_0 = arith.constant 0 : i32
    %c0_i32_1 = arith.constant 0 : i32
    return %arg1, %c0_i32, %c0_i32_0 : i32, i32, i32
  }
  func.func @transform_11(%arg0: i32, %arg1: i32) -> (i32, i32, i32) {
    %c0_i32 = arith.constant 0 : i32
    %c0_i32_0 = arith.constant 0 : i32
    %c0_i32_1 = arith.constant 0 : i32
    return %arg1, %c0_i32, %c0_i32_0 : i32, i32, i32
  }
  func.func @transform_12(%arg0: i32, %arg1: i32) -> (i32, i32, i32) {
    %c0_i32 = arith.constant 0 : i32
    %c0_i32_0 = arith.constant 0 : i32
    %c0_i32_1 = arith.constant 0 : i32
    return %arg1, %c0_i32, %c0_i32_0 : i32, i32, i32
  }
  func.func @transform_13(%arg0: i32, %arg1: i32) -> (i32, i32, i32) {
    %c0_i32 = arith.constant 0 : i32
    %c0_i32_0 = arith.constant 0 : i32
    %c0_i32_1 = arith.constant 0 : i32
    return %arg1, %c0_i32, %c0_i32_0 : i32, i32, i32
  }
  func.func @transform_14(%arg0: i32, %arg1: i32) -> (i32, i32, i32) {
    %c0_i32 = arith.constant 0 : i32
    %c0_i32_0 = arith.constant 0 : i32
    %c0_i32_1 = arith.constant 0 : i32
    return %arg1, %c0_i32, %c0_i32_0 : i32, i32, i32
  }
  func.func @transform_15(%arg0: i32, %arg1: i32) -> (i32, i32, i32) {
    %c0_i32 = arith.constant 0 : i32
    %c0_i32_0 = arith.constant 0 : i32
    %c0_i32_1 = arith.constant 0 : i32
    return %arg1, %c0_i32, %c0_i32_0 : i32, i32, i32
  }
  func.func @transform_16(%arg0: i32, %arg1: i32) -> (i32, i32) {
    %c0_i32 = arith.constant 0 : i32
    %c0_i32_0 = arith.constant 0 : i32
    %c0_i32_1 = arith.constant 0 : i32
    return %c0_i32, %c0_i32_0 : i32, i32
  }
  func.func @transform_17(%arg0: i32, %arg1: i32) -> (i32, i32) {
    %c0_i32 = arith.constant 0 : i32
    %c0_i32_0 = arith.constant 0 : i32
    %c0_i32_1 = arith.constant 0 : i32
    return %c0_i32, %c0_i32_0 : i32, i32
  }
  func.func @transform_18(%arg0: i32, %arg1: i32) -> (i32, i32, i32) {
    %c0_i32 = arith.constant 0 : i32
    %c0_i32_0 = arith.constant 0 : i32
    %c0_i32_1 = arith.constant 0 : i32
    return %arg0, %c0_i32, %c0_i32_0 : i32, i32, i32
  }
}

</mosaic_0001>

<bundles_post_ra>
// kernel: _lambda_.1
= control target key start
LH: loop header
LB: loop body
LE: loop exit
PB: predicated region body
PF: predicated region fallthrough
CT: control target
= control target key end

     0   :  { %s4339_s0 = inlined_call_operand.hbm [shape: f32[2,8,32], index: 0, kind: input, shape index: {}]   ;;  %s4340_s1 = inlined_call_operand.hbm [shape: f32[2,1,8], index: 1, kind: input, shape index: {}]   ;;  %s4341_s2 = inlined_call_operand.hbm [shape: f32[1,32], index: 2, kind: input, shape index: {}]   ;;  %s4342_s3 = inlined_call_operand.hbm [shape: f32[1,32], index: 3, kind: input, shape index: {}, may-alias: {3,17}]   ;;  %s4343_s4 = inlined_call_operand.hbm [shape: bf16[2,32,96], index: 4, kind: input, shape index: {}]   ;;  %s4344_s5 = inlined_call_operand.hbm [shape: f32[2,1,96], index: 5, kind: input, shape index: {}]   ;;  %s4345_s6 = inlined_call_operand.hbm [shape: bf16[2,32,32], index: 6, kind: input, shape index: {}]   ;;  %s4346_s7 = inlined_call_operand.hbm [shape: f32[2,1,32], index: 7, kind: input, shape index: {}, may-alias: {7,9,13,15}]   ;;  %s4347_s8 = inlined_call_operand.hbm [shape: f32[2,1,32], index: 8, kind: input, shape index: {}, may-alias: {8,14}]   ;;  %s4348_s9 = inlined_call_operand.hbm [shape: f32[2,1,32], index: 9, kind: input, shape index: {}, may-alias: {7,9,13,15}]   ;;  %s4349_s10 = inlined_call_operand.hbm [shape: bf16[2,32,64], index: 10, kind: input, shape index: {}]   ;;  %s4350_s11 = inlined_call_operand.hbm [shape: f32[2,1,64], index: 11, kind: input, shape index: {}]   ;;  %s4351_s12 = inlined_call_operand.hbm [shape: bf16[2,64,32], index: 12, kind: input, shape index: {}]   ;;  %s4352_s13 = inlined_call_operand.hbm [shape: f32[2,1,32], index: 13, kind: input, shape index: {}, may-alias: {7,9,13,15}]   ;;  %s4353_s14 = inlined_call_operand.hbm [shape: f32[2,1,32], index: 14, kind: input, shape index: {}, may-alias: {8,14}]   ;;  %s4354_s15 = inlined_call_operand.hbm [shape: f32[2,1,32], index: 15, kind: input, shape index: {}, may-alias: {7,9,13,15}]   ;;  %s4355_s16 = inlined_call_operand.hbm [shape: bf16[32,32], index: 16, kind: input, shape index: {}]   ;;  %s4356_s17 = inlined_call_operand.hbm [shape: f32[1,32], index: 17, kind: input, shape index: {}, may-alias: {3,17}]   ;;  %s4357_s18 = inlined_call_operand.hbm [shape: f32[2,1,32], index: 18, kind: output, shape index: {}]  }
   0x1   :  { %4397 = sst [smem:[#allocation61_spill]] %s4339_s0 }
   0x2   :  { %4398 = sst [smem:[#allocation62_spill]] %s4340_s1 }
   0x3   :  { %4399 = sst [smem:[#allocation63_spill]] %s4341_s2 }
   0x4   :  { %4400 = sst [smem:[#allocation64_spill]] %s4342_s3 }
   0x5   :  { %4401 = sst [smem:[#allocation65_spill]] %s4343_s4 }
   0x6   :  { %4402 = sst [smem:[#allocation66_spill]] %s4344_s5 }
   0x7   :  { %4403 = sst [smem:[#allocation67_spill]] %s4345_s6 }
   0x8   :  { %4404 = sst [smem:[#allocation68_spill]] %s4346_s7 }
   0x9   :  { %4405 = sst [smem:[#allocation69_spill]] %s4347_s8 }
   0xa   :  { %4406 = sst [smem:[#allocation70_spill]] %s4349_s10 }
   0xb   :  { %4407 = sst [smem:[#allocation71_spill]] %s4350_s11 }
   0xc   :  { %4408 = sst [smem:[#allocation72_spill]] %s4351_s12 }
   0xd   :  { %4409 = sst [smem:[#allocation73_spill]] %s4352_s13 }
   0xe   :  { %4410 = sst [smem:[#allocation74_spill]] %s4353_s14 }
   0xf   :  { %4411 = sst [smem:[#allocation75_spill]] %s4354_s15 }
  0x10   :  { %4412 = sst [smem:[#allocation76_spill]] %s4355_s16 }
  0x11   :  { %4413 = sst [smem:[#allocation77_spill]] %s4357_s18 }
  0x12   :  { %23 = vsyncpa [#allocation4], 0 }
  0x13   :  { %25 = vsyncpa [#allocation4 + $0x1], 0 }
  0x14   :  { %26 = vsyncpa [#allocation7], 0 }
  0x15   :  { %28 = vsyncpa [#allocation7 + $0x1], 0 }
  0x16   :  { %29 = vsyncpa [#allocation10], 0 }
  0x17   :  { %30 = vsyncpa [#allocation25], 0 }
  0x18   :  { %31 = vsyncpa [#allocation5], 0 }
  0x19   :  { %33 = vsyncpa [#allocation5 + $0x1], 0  ;;  %s3398_s27 = smov 0   ;;  %s3400_s28 = smov 0  }
  0x1a   :  { %s3402_s29 = smov 0   ;;  %s3404_s30 = smov 0  }
  0x1b   :  { %s3406_s0 = smov 0   ;;  %s3408_s19 = smov 0  }
  0x1c   :  { %s3410_s1 = smov 0   ;;  %s3412_s20 = smov 0  }
  0x1d   :  { %s3414_s21 = smov 0   ;;  %s3416_s22 = smov 0  }
  0x1e   :  { %s3418_s2 = smov 0  }
  0x1f LB: > { %4414 = sst [smem:[#allocation46_spill]] %s3233_s28  ;;  %s3454_s23 = sadd.s32 4294967295, %s3269_s2   ;;  %s3269_s2 = sphi %s3418_s2, %s39_s2   ;;  %s3265_s22 = sphi %s3416_s22, %s4511_s22   ;;  %s3261_s21 = sphi %s3414_s21, %s4510_s21   ;;  %s3257_s20 = sphi %s3412_s20, %s4509_s20   ;;  %s3253_s1 = sphi %s3410_s1, %s4508_s1   ;;  %s3249_s19 = sphi %s3408_s19, %s4507_s19   ;;  %s3245_s0 = sphi %s3406_s0, %s4506_s0   ;;  %s3241_s30 = sphi %s3404_s30, %s4500_s30   ;;  %s3237_s29 = sphi %s3402_s29, %s4505_s29   ;;  %s3233_s28 = sphi %s3400_s28, %s4504_s28   ;;  %s3229_s27 = sphi %s3398_s27, %s4498_s27  }
  0x20   : > { %4415 = sst [smem:[#allocation47_spill]] %s3241_s30  ;;  %s2188_s24 = sadd.s32 4294967294, %s3269_s2  }
  0x21   : > { %4416 = sst [smem:[#allocation48_spill]] %s3245_s0  ;;  %s48_s25 = sadd.s32 1, %s3261_s21 }
  0x22   : > { %4417 = sst [smem:[#allocation49_spill]] %s3253_s1  ;;  %s51_s26 = sadd.s32 1, %s3265_s22 }
  0x23   : > { %4418 = sst [smem:[#allocation50_spill]] %s3257_s20  ;;  %p49_p0 = scmp.ge.s32.totalorder %s48_s25, 2 }
  0x24   : > { %4419 = sst [smem:[#allocation51_spill]] %s3454_s23  ;;  %s58_s18 = sadd.s32 1, %s3249_s19 }
  0x25   : > { %p4370_p1 = scmp.ne.s32.totalorder %s3249_s19, %s3245_s0  ;;  %p66_p2 = scmp.eq.s32.totalorder %s3269_s2, 0 }
  0x26   : > { %s4513_s25 = smov (%p49_p0, %s48_s25), 0  ;;  %s4515_s26 = smov (!%p49_p0, %s51_s26), %s3265_s22 }
  0x27   : > { %4420 = sst [smem:[#allocation52_spill]] %s4513_s25  ;;  %p3471_p3 = por %p66_p2, %p4370_p1 }
  0x28   : > { %p4369_p4 = scmp.ne.s32.totalorder %s3245_s0, %s3241_s30  ;;  %p53_p5 = scmp.ge.s32.totalorder %s4515_s26, 2 }
  0x29   : > { %s4421_s20 = scalar_select %p3471_p3, 1, 0 }
  0x2a   : > { %p4383_p6 = scmp.eq.s32.totalorder %s3454_s23, 0  ;;  %s149_s1 = ssub.s32 %s3261_s21, %s4513_s25 }
  0x2b   : > { %s152_s15 = sadd.s32 1, %s3237_s29  ;;  %s4517_s26 = smov (%p53_p5, %s4515_s26), 0 }
  0x2c   : > { %4422 = sst [smem:[#allocation53_spill]] %s4517_s26  ;;  %p3488_p7 = por %p4383_p6, %p4369_p4 }
  0x2d   : > { %p150_p8 = scmp.eq.s32.totalorder %s149_s1, 0  ;;  %s55_s13 = ssub.s32 %s3265_s22, %s4517_s26 }
  0x2e   : > { %s4423_s14 = scalar_select %p3488_p7, 1, 0 }
  0x2f   : > { %p159_p9 = scmp.ne.s32.totalorder %s3237_s29, %s3233_s28  ;;  %p56_p10 = scmp.eq.s32.totalorder %s55_s13, 0 }
  0x30   : > { %4424 = sst [smem:[#allocation54_spill]] %s4423_s14  ;;  %p165_p11 = scmp.ne.s32.totalorder %s3233_s28, %s3229_s27 }
  0x31   : > { %s3499_s25 = scalar_select %p150_p8, %s3237_s29, %s152_s15  }
  0x32   : > { %s3502_s12 = scalar_select %p56_p10, %s3249_s19, %s58_s18  }
  0x33   : > { %4425 = sst [smem:[#allocation55_spill]] %s3499_s25  ;;  %p3506_p12 = por %p159_p9, %p66_p2 }
  0x34   : > { %4426 = sst [smem:[#allocation56_spill]] %s3502_s12  ;;  %p3512_p13 = por %p165_p11, %p4383_p6 }
  0x35   : > { %s4427_s11 = scalar_select %p3506_p12, 1, 0 }
  0x36   : > { %s4428_s10 = scalar_select %p3512_p13, 1, 0 }
  0x37   : > { %p517_p0 = scmp.eq.s32.totalorder %s3454_s23, 3  ;;  %p523_p5 = scmp.eq.s32.totalorder %s2188_s24, 3 }
  0x38   : > { %4429 = sst [smem:[#allocation57_spill]] %s4428_s10  ;;  %p2189_p4 = scmp.ge.s32.totalorder %s3269_s2, 1 }
  0x39   : > { %p530_p1 = scmp.lt.s32.totalorder %s3269_s2, 5  ;;  %p4430_p7 = scmp.ne.s32.totalorder %s3249_s19, %s3245_s0 }
  0x3a   : > { %p4433_p8 = scmp.ne.s32.totalorder %s3245_s0, %s3241_s30  ;;  %s3271_s27 = smov [#allocation9]  }
  0x3b   : > { %p3522_p3 = por %p517_p0, %p4430_p7  ;;  %p3533_p2 = pnand %p2189_p4, %p530_p1 }
  0x3c   : > { %p3529_p10 = por %p523_p5, %p4433_p8  ;;  %s554_s1 = sshll.u32 %s3271_s27, 4  ;;  %s555_s1 = int_to_ptr.vmem [resolvable:$true] %s554_s1 }
  0x3d   : > { %s4431_s13 = scalar_select %p3522_p3, 1, 0 }
  0x3e   : > { %s4434_s15 = scalar_select %p3529_p10, 1, 0 }
  0x3f   : > { %4432 = sst [smem:[#allocation58_spill]] %s4431_s13  ;;  %p2414_p9 = pneg %p3533_p2 }
  0x40   : > { %4435 = sst [smem:[#allocation59_spill]] %s4434_s15  ;;  %s3272_s26 = smov [#allocation8]  }
  0x41   : > { %s4436_s18 = scalar_select %p3533_p2, 1, 0 }
  0x42   : > { %p3541_p7 = pnand %p2414_p9, %p4383_p6  ;;  %s543_s12 = sshll.u32 %s3272_s26, 4  ;;  %s544_s12 = int_to_ptr.vmem [resolvable:$true] %s543_s12 }
  0x43   : > { %4437 = sst [smem:[#allocation60_spill]] %s4436_s18  ;;  %s4439_s3 = sld [smem:[#allocation64_spill]] }
  0x44   : > { %p3553_p4 = pneg %p3541_p7 }
  0x49   : > { %s2575_s30 = scalar_lea.hbm %s4439_s3, 16 }
  0x4a   : > { %p2576_p1 = scmp.ne.s32.totalorder %s4439_s3, %s2575_s30  ;;  %p2582_p5 = scmp.lt.u32.totalorder %s2575_s30, %s4439_s3 }
  0x4c   : > { %p2578_p11 = pnand %p3553_p4, %p2576_p1 }
  0x4e   : > { %p2579_p0 = pneg %p2578_p11 }
  0x50   : > { %p2584_p8 = pnand %p2582_p5, %p2579_p0 }
  0x52   : > { %2587 = shalt.err (!%p2584_p8)
}
  0x53   : > { %s2588_s25 = scalar_lea.vmem %s555_s1, 16  ;;  %s2595_s10 = scalar_lea.vmem %s555_s1, 32 }
  0x54   : > { %p2589_p9 = scmp.ne.s32.totalorder %s555_s1, %s2588_s25  ;;  %p2596_p3 = scmp.lt.s32.totalorder %s555_s1, %s555_s1 }
  0x55   : > { %p2597_p13 = scmp.lt.s32.totalorder %s2595_s10, %s2588_s25 }
  0x56   : > { %p2591_p6 = pnand %p2589_p9, %p3553_p4 }
  0x57   : > { %p2598_p2 = por %p2597_p13, %p2596_p3 }
  0x58   : > { %p2592_p10 = pneg %p2591_p6 }
  0x5a   : > { %p2599_p12 = pnand %p2598_p2, %p2592_p10 }
  0x5c   : > { %2602 = shalt.err (!%p2599_p12)
}
  0x5d   : > { %2420 = dma.hbm_to_vmem [thread:$0]  (!%p3541_p7), %s4439_s3, 16, %s555_s1, [#allocation10]  }
  0x5e   : > { %s4441_s30 = sld [smem:[#allocation63_spill]] }
  0x64   : > { %s4442_s15 = smov %s4441_s30  ;;  %s2603_s0 = scalar_lea.hbm %s4441_s30, 16 }
  0x65   : > { %p2604_p6 = scmp.ne.s32.totalorder %s4442_s15, %s2603_s0  ;;  %p2610_p12 = scmp.lt.u32.totalorder %s2603_s0, %s4442_s15 }
  0x67   : > { %p2606_p3 = pnand %p2604_p6, %p3553_p4 }
  0x69   : > { %p2607_p13 = pneg %p2606_p3 }
  0x6b   : > { %p2612_p10 = pnand %p2610_p12, %p2607_p13 }
  0x6d   : > { %2615 = shalt.err (!%p2612_p10)
}
  0x6e   : > { %s2616_s26 = scalar_lea.vmem %s544_s12, 16  ;;  %s2623_s1 = scalar_lea.vmem %s544_s12, 32 }
  0x6f   : > { %p2617_p2 = scmp.ne.s32.totalorder %s544_s12, %s2616_s26  ;;  %p2624_p0 = scmp.lt.s32.totalorder %s544_s12, %s544_s12 }
  0x70   : > { %p2625_p5 = scmp.lt.s32.totalorder %s2623_s1, %s2616_s26 }
  0x71   : > { %p2619_p1 = pnand %p2617_p2, %p3553_p4 }
  0x72   : > { %p2626_p8 = por %p2625_p5, %p2624_p0 }
  0x73   : > { %p2620_p11 = pneg %p2619_p1 }
  0x75   : > { %p2627_p9 = pnand %p2626_p8, %p2620_p11 }
  0x77   : > { %2630 = shalt.err (!%p2627_p9)
}
  0x78   : > { %2417 = dma.hbm_to_vmem [thread:$0]  (!%p3541_p7), %s4442_s15, 16, %s544_s12, [#allocation7]  }
  0x79   : > { %s3273_s0 = smov [#allocation23]   ;;  %s4443_s16 = sld [smem:[#allocation76_spill]] }
  0x7a   : > { %s564_s13 = sshll.u32 %s3273_s0, 4  ;;  %s565_s13 = int_to_ptr.vmem [resolvable:$true] %s564_s13 }
  0x7f   : > { %s2631_s30 = scalar_lea.hbm %s4443_s16, 256 }
  0x80   : > { %p2632_p6 = scmp.ne.s32.totalorder %s4443_s16, %s2631_s30  ;;  %p2638_p12 = scmp.lt.u32.totalorder %s2631_s30, %s4443_s16 }
  0x82   : > { %p2634_p3 = pnand %p2632_p6, %p3553_p4 }
  0x84   : > { %p2635_p13 = pneg %p2634_p3 }
  0x86   : > { %p2640_p10 = pnand %p2638_p12, %p2635_p13 }
  0x88   : > { %2643 = shalt.err (!%p2640_p10)
}
  0x89   : > { %s2644_s12 = scalar_lea.vmem %s565_s13, 256  ;;  %p2652_p0 = scmp.lt.s32.totalorder %s565_s13, %s565_s13 }
  0x8a   : > { %p2645_p2 = scmp.ne.s32.totalorder %s565_s13, %s2644_s12  ;;  %p2653_p5 = scmp.lt.s32.totalorder %s2644_s12, %s2644_s12 }
  0x8c   : > { %p2647_p1 = pnand %p2645_p2, %p3553_p4  ;;  %p2654_p8 = por %p2653_p5, %p2652_p0 }
  0x8e   : > { %p2648_p11 = pneg %p2647_p1 }
  0x90   : > { %p2655_p9 = pnand %p2654_p8, %p2648_p11 }
  0x92   : > { %2658 = shalt.err (!%p2655_p9)
}
  0x93   : > { %s3274_s23 = smov 64   ;;  %s3275_s18 = smov 4  }
  0x94   : > { %2423 = dma.hbm_to_vmem [thread:$0]  (!%p3541_p7), %s4443_s16, 256, %s565_s13, [#allocation10], %s3274_s23, %s3274_s23, %s3275_s18  }
  0x95   : > { %s3276_s28 = smov [#allocation24]   ;;  %s2659_s26 = scalar_lea.hbm %s4356_s17, 16 }
  0x96   : > { %s578_s30 = sshll.u32 %s3276_s28, 4  ;;  %p2660_p6 = scmp.ne.s32.totalorder %s4356_s17, %s2659_s26  ;;  %s579_s30 = int_to_ptr.vmem [resolvable:$true] %s578_s30 }
  0x97   : > { %p2666_p12 = scmp.lt.u32.totalorder %s2659_s26, %s4356_s17 }
  0x98   : > { %p2662_p3 = pnand %p2660_p6, %p3553_p4 }
  0x9a   : > { %p2663_p13 = pneg %p2662_p3 }
  0x9c   : > { %p2668_p10 = pnand %p2666_p12, %p2663_p13 }
  0x9e   : > { %2671 = shalt.err (!%p2668_p10)
}
  0x9f   : > { %s2672_s13 = scalar_lea.vmem %s579_s30, 16  ;;  %s2679_s23 = scalar_lea.vmem %s579_s30, 32 }
  0xa0   : > { %p2673_p2 = scmp.ne.s32.totalorder %s579_s30, %s2672_s13  ;;  %p2680_p0 = scmp.lt.s32.totalorder %s579_s30, %s579_s30 }
  0xa1   : > { %p2681_p5 = scmp.lt.s32.totalorder %s2679_s23, %s2672_s13 }
  0xa2   : > { %p2675_p1 = pnand %p2673_p2, %p3553_p4 }
  0xa3   : > { %p2682_p8 = por %p2681_p5, %p2680_p0 }
  0xa4   : > { %p2676_p11 = pneg %p2675_p1 }
  0xa6   : > { %p2683_p9 = pnand %p2682_p8, %p2676_p11 }
  0xa8   : > { %2686 = shalt.err (!%p2683_p9)
}
  0xa9   : > { %2426 = dma.hbm_to_vmem [thread:$0]  (!%p3541_p7), %s4356_s17, 16, %s579_s30, [#allocation25]  }
  0xaa   : > { %p2194_p6 = scmp.ge.s32.totalorder %s3269_s2, 4 }
  0xab   : > { %s589_s3 = sand.u32 (!%p2194_p6), 1, %s3269_s2   ;;  %s591_s27 = sand.u32 (!%p2194_p6), 1, %s3249_s19  }
  0xac   : > { %585 = sbr.rel (%p2194_p6) target bundleno = 565 (0x235), region = 32  ;;  %s2195_s15 = sshll.u32 (!%p2194_p6), %s591_s27, 3 }
  0xad   : > { %s2196_s14 = sshll.u32 (!%p2194_p6), %s3265_s22, 7  ;;  %s4444_s25 = sld [smem:[#allocation61_spill]] (!%p2194_p6) }
  0xae   : > { %s593_s30 = scalar_lea.vmem (!%p2194_p6), [#allocation3], %s2195_s15  ;;  %s3636_s1 = scalar_lea.sflag (!%p2194_p6), [#allocation4], %s589_s3 }
  0xaf   : > { %s600_s26 = sshll.u32 (!%p2194_p6), %s593_s30, 4  ;;  %p4445_p4 = scmp.ne.s32.totalorder (!%p2194_p6), %s4421_s20, 0  ;;  %s601_s26 = int_to_ptr.vmem [resolvable:$true] %s600_s26 }
  0xb3   : > { %s3632_s10 = scalar_lea.hbm %s4444_s25, %s2196_s14  ;;  %s2691_s18 = scalar_lea.hbm %s4444_s25, 256 }
  0xb4   : > { %s2687_s12 = scalar_lea.hbm %s3632_s10, 128  ;;  %p2692_p12 = scmp.lt.u32.totalorder %s3632_s10, %s4444_s25 }
  0xb5   : > { %p2688_p7 = scmp.ne.s32.totalorder %s3632_s10, %s2687_s12  ;;  %p2693_p10 = scmp.lt.u32.totalorder %s2691_s18, %s2687_s12 }
  0xb6   : > { %p2695_p1 = scmp.lt.u32.totalorder %s2687_s12, %s3632_s10 }
  0xb7   : > { %p2689_p3 = pnand %p2688_p7, %p4445_p4  ;;  %p2694_p2 = por %p2693_p10, %p2692_p12 }
  0xb9   : > { %p2690_p13 = pneg %p2689_p3  ;;  %p2696_p11 = por %p2695_p1, %p2694_p2 }
  0xbb   : > { %p2697_p0 = pnand %p2696_p11, %p2690_p13 }
  0xbd   : > { %2700 = shalt.err (!%p2697_p0)
}
  0xbe   : > { %s2701_s15 = scalar_lea.vmem %s601_s26, 128  ;;  %s3277_s28 = smov [#allocation3]  }
  0xbf   : > { %p2702_p5 = scmp.ne.s32.totalorder %s601_s26, %s2701_s15  ;;  %s2705_s24 = sshll.u32 %s3277_s28, 4  ;;  %s2706_s24 = int_to_ptr.vmem [resolvable:$false] %s2705_s24 }
  0xc0   : > { %s2707_s30 = scalar_lea.vmem %s2706_s24, 256  ;;  %p2708_p6 = scmp.lt.s32.totalorder %s601_s26, %s2706_s24 }
  0xc1   : > { %p2703_p8 = pnand %p2702_p5, %p4445_p4  ;;  %p2709_p7 = scmp.lt.s32.totalorder %s2707_s30, %s2701_s15 }
  0xc3   : > { %p2704_p9 = pneg %p2703_p8  ;;  %p2710_p3 = por %p2709_p7, %p2708_p6 }
  0xc5   : > { %p2711_p10 = pnand %p2710_p3, %p2704_p9 }
  0xc7   : > { %2714 = shalt.err (!%p2711_p10)
}
  0xc8   : > { %2376 = dma.hbm_to_vmem [thread:$0]  (%p4445_p4), %s3632_s10, 128, %s601_s26, %s3636_s1  }
  0xc9   : > { %s2197_s12 = sshll.u32 %s3265_s22, 4  ;;  %s4446_s18 = sld [smem:[#allocation62_spill]] }
  0xca   : > { %s610_s14 = scalar_lea.vmem [#allocation6], %s591_s27  ;;  %s3667_s28 = sand.u32 1, %s3237_s29  }
  0xcb   : > { %s617_s15 = sshll.u32 %s610_s14, 4  ;;  %s3671_s24 = scalar_lea.sflag [#allocation7], %s589_s3  ;;  %s3664_s15 = int_to_ptr.vmem [resolvable:$true] %s617_s15 }
  0xcf   : > { %s3660_s0 = scalar_lea.hbm %s4446_s18, %s2197_s12  ;;  %s2719_s12 = scalar_lea.hbm %s4446_s18, 32 }
  0xd0   : > { %s2715_s10 = scalar_lea.hbm %s3660_s0, 16  ;;  %p2720_p1 = scmp.lt.u32.totalorder %s3660_s0, %s4446_s18 }
  0xd1   : > { %p2716_p13 = scmp.ne.s32.totalorder %s3660_s0, %s2715_s10  ;;  %p2721_p11 = scmp.lt.u32.totalorder %s2719_s12, %s2715_s10 }
  0xd2   : > { %p2723_p5 = scmp.lt.u32.totalorder %s2715_s10, %s3660_s0 }
  0xd3   : > { %p2717_p12 = pnand %p2716_p13, %p4445_p4  ;;  %p2722_p0 = por %p2721_p11, %p2720_p1 }
  0xd5   : > { %p2718_p2 = pneg %p2717_p12  ;;  %p2724_p8 = por %p2723_p5, %p2722_p0 }
  0xd7   : > { %p2725_p9 = pnand %p2724_p8, %p2718_p2 }
  0xd9   : > { %2728 = shalt.err (!%p2725_p9)
}
  0xda   : > { %s2729_s3 = scalar_lea.vmem %s3664_s15, 16  ;;  %s3278_s27 = smov [#allocation6]  }
  0xdb   : > { %p2730_p6 = scmp.ne.s32.totalorder %s3664_s15, %s2729_s3  ;;  %s2733_s14 = sshll.u32 %s3278_s27, 4  ;;  %s2734_s14 = int_to_ptr.vmem [resolvable:$false] %s2733_s14 }
  0xdc   : > { %s2735_s26 = scalar_lea.vmem %s2734_s14, 32  ;;  %p2736_p10 = scmp.lt.s32.totalorder %s3664_s15, %s2734_s14 }
  0xdd   : > { %p2731_p7 = pnand %p2730_p6, %p4445_p4  ;;  %p2737_p13 = scmp.lt.s32.totalorder %s2735_s26, %s2729_s3 }
  0xdf   : > { %p2732_p3 = pneg %p2731_p7  ;;  %p2738_p12 = por %p2737_p13, %p2736_p10 }
  0xe1   : > { %p2739_p1 = pnand %p2738_p12, %p2732_p3 }
  0xe3   : > { %2742 = shalt.err (!%p2739_p1)
}
  0xe4   : > { %2377 = dma.hbm_to_vmem [thread:$0]  (%p4445_p4), %s3660_s0, 16, %s3664_s15, %s3671_s24  }
  0xe5   : > { %s3696_s10 = sshll.u32 %s3667_s28, 4  ;;  %s3699_s30 = sshll.u32 %s3261_s21, 8 }
  0xe6   : > { %s4447_s4 = sld [smem:[#allocation65_spill]]  ;;  %s628_s20 = scalar_lea.vmem [#allocation11], %s3696_s10 }
  0xe7   : > { %s635_s3 = sshll.u32 %s628_s20, 4  ;;  %p4448_p2 = scmp.ne.s32.totalorder %s4427_s11, 0  ;;  %s3708_s3 = int_to_ptr.vmem [resolvable:$true] %s635_s3 }
  0xec   : > { %s3705_s23 = scalar_lea.hbm %s4447_s4, %s3699_s30  ;;  %s2747_s14 = scalar_lea.hbm %s4447_s4, 512 }
  0xed   : > { %s2743_s0 = scalar_lea.hbm %s3705_s23, 256  ;;  %p2748_p5 = scmp.lt.u32.totalorder %s3705_s23, %s4447_s4 }
  0xee   : > { %p2744_p4 = scmp.ne.s32.totalorder %s3705_s23, %s2743_s0  ;;  %p2749_p8 = scmp.lt.u32.totalorder %s2747_s14, %s2743_s0 }
  0xef   : > { %p2751_p6 = scmp.lt.u32.totalorder %s2743_s0, %s3705_s23 }
  0xf0   : > { %p2745_p11 = pnand %p2744_p4, %p4448_p2  ;;  %p2750_p9 = por %p2749_p8, %p2748_p5 }
  0xf2   : > { %p2746_p0 = pneg %p2745_p11  ;;  %p2752_p7 = por %p2751_p6, %p2750_p9 }
  0xf4   : > { %p2753_p3 = pnand %p2752_p7, %p2746_p0 }
  0xf6   : > { %2756 = shalt.err (!%p2753_p3)
}
  0xf7   : > { %s2757_s13 = scalar_lea.vmem %s3708_s3, 256  ;;  %s3279_s20 = smov [#allocation11]  }
  0xf8   : > { %p2758_p10 = scmp.ne.s32.totalorder %s3708_s3, %s2757_s13  ;;  %s2761_s15 = sshll.u32 %s3279_s20, 4  ;;  %s2762_s15 = int_to_ptr.vmem [resolvable:$false] %s2761_s15 }
  0xf9   : > { %s2763_s27 = scalar_lea.vmem %s2762_s15, 512  ;;  %p2764_p1 = scmp.lt.s32.totalorder %s3708_s3, %s2762_s15 }
  0xfa   : > { %p2759_p13 = pnand %p2758_p10, %p4448_p2  ;;  %p2765_p4 = scmp.lt.s32.totalorder %s2763_s27, %s2757_s13 }
  0xfc   : > { %p2760_p12 = pneg %p2759_p13  ;;  %p2766_p11 = por %p2765_p4, %p2764_p1 }
  0xfe   : > { %p2767_p5 = pnand %p2766_p11, %p2760_p12 }
 0x100   : > { %2770 = shalt.err (!%p2767_p5)
}
 0x101   : > { %s4393_s0 = smov 64   ;;  %s4395_s14 = smov 4  }
 0x102   : > { %2378 = dma.hbm_to_vmem [thread:$0]  (%p4448_p2), %s3705_s23, 256, %s3708_s3, %s3636_s1, %s4393_s0, %s4393_s0, %s4395_s14  }
 0x103   : > { %s3736_s26 = sshll.u32 %s3261_s21, 4  ;;  %s4449_s5 = sld [smem:[#allocation66_spill]] }
 0x104   : > { %s648_s15 = scalar_lea.vmem [#allocation12], %s3667_s28 }
 0x105   : > { %s655_s27 = sshll.u32 %s648_s15, 4  ;;  %s656_s27 = int_to_ptr.vmem [resolvable:$true] %s655_s27 }
 0x109   : > { %s3742_s20 = scalar_lea.hbm %s4449_s5, %s3736_s26  ;;  %s2775_s0 = scalar_lea.hbm %s4449_s5, 32 }
 0x10a   : > { %s2771_s4 = scalar_lea.hbm %s3742_s20, 16  ;;  %p2776_p6 = scmp.lt.u32.totalorder %s3742_s20, %s4449_s5 }
 0x10b   : > { %p2772_p0 = scmp.ne.s32.totalorder %s3742_s20, %s2771_s4  ;;  %p2777_p7 = scmp.lt.u32.totalorder %s2775_s0, %s2771_s4 }
 0x10c   : > { %p2779_p10 = scmp.lt.u32.totalorder %s2771_s4, %s3742_s20 }
 0x10d   : > { %p2773_p8 = pnand %p2772_p0, %p4448_p2  ;;  %p2778_p3 = por %p2777_p7, %p2776_p6 }
 0x10f   : > { %p2774_p9 = pneg %p2773_p8  ;;  %p2780_p13 = por %p2779_p10, %p2778_p3 }
 0x111   : > { %p2781_p12 = pnand %p2780_p13, %p2774_p9 }
 0x113   : > { %2784 = shalt.err (!%p2781_p12)
}
 0x114   : > { %s2785_s13 = scalar_lea.vmem %s656_s27, 16  ;;  %s3282_s15 = smov [#allocation12]  }
 0x115   : > { %p2786_p1 = scmp.ne.s32.totalorder %s656_s27, %s2785_s13  ;;  %s2789_s16 = sshll.u32 %s3282_s15, 4  ;;  %s2790_s16 = int_to_ptr.vmem [resolvable:$false] %s2789_s16 }
 0x116   : > { %s2791_s23 = scalar_lea.vmem %s2790_s16, 32  ;;  %p2792_p5 = scmp.lt.s32.totalorder %s656_s27, %s2790_s16 }
 0x117   : > { %p2787_p4 = pnand %p2786_p1, %p4448_p2  ;;  %p2793_p0 = scmp.lt.s32.totalorder %s2791_s23, %s2785_s13 }
 0x119   : > { %p2788_p11 = pneg %p2787_p4  ;;  %p2794_p8 = por %p2793_p0, %p2792_p5 }
 0x11b   : > { %p2795_p6 = pnand %p2794_p8, %p2788_p11 }
 0x11d   : > { %2798 = shalt.err (!%p2795_p6)
}
 0x11e   : > { %2379 = dma.hbm_to_vmem [thread:$0]  (%p4448_p2), %s3742_s20, 16, %s656_s27, %s3671_s24  }
 0x11f   : > { %s4450_s6 = sld [smem:[#allocation67_spill]]  ;;  %s666_s16 = scalar_lea.vmem [#allocation13], %s3696_s10 }
 0x120   : > { %s673_s3 = sshll.u32 %s666_s16, 4  ;;  %s3770_s3 = int_to_ptr.vmem [resolvable:$true] %s673_s3 }
 0x125   : > { %s3767_s14 = scalar_lea.hbm %s4450_s6, %s3699_s30  ;;  %s2803_s27 = scalar_lea.hbm %s4450_s6, 512 }
 0x126   : > { %s2799_s12 = scalar_lea.hbm %s3767_s14, 256  ;;  %p2804_p10 = scmp.lt.u32.totalorder %s3767_s14, %s4450_s6 }
 0x127   : > { %p2800_p9 = scmp.ne.s32.totalorder %s3767_s14, %s2799_s12  ;;  %p2805_p13 = scmp.lt.u32.totalorder %s2803_s27, %s2799_s12 }
 0x128   : > { %p2807_p1 = scmp.lt.u32.totalorder %s2799_s12, %s3767_s14 }
 0x129   : > { %p2801_p7 = pnand %p2800_p9, %p4448_p2  ;;  %p2806_p12 = por %p2805_p13, %p2804_p10 }
 0x12b   : > { %p2802_p3 = pneg %p2801_p7  ;;  %p2808_p4 = por %p2807_p1, %p2806_p12 }
 0x12d   : > { %p2809_p11 = pnand %p2808_p4, %p2802_p3 }
 0x12f   : > { %2812 = shalt.err (!%p2809_p11)
}
 0x130   : > { %s2813_s4 = scalar_lea.vmem %s3770_s3, 256  ;;  %s3283_s0 = smov [#allocation13]  }
 0x131   : > { %p2814_p5 = scmp.ne.s32.totalorder %s3770_s3, %s2813_s4  ;;  %s2817_s16 = sshll.u32 %s3283_s0, 4  ;;  %s2818_s16 = int_to_ptr.vmem [resolvable:$false] %s2817_s16 }
 0x132   : > { %s2819_s13 = scalar_lea.vmem %s2818_s16, 512  ;;  %p2820_p6 = scmp.lt.s32.totalorder %s3770_s3, %s2818_s16 }
 0x133   : > { %p2815_p0 = pnand %p2814_p5, %p4448_p2  ;;  %p2821_p9 = scmp.lt.s32.totalorder %s2819_s13, %s2813_s4 }
 0x135   : > { %p2816_p8 = pneg %p2815_p0  ;;  %p2822_p7 = por %p2821_p9, %p2820_p6 }
 0x137   : > { %p2823_p10 = pnand %p2822_p7, %p2816_p8 }
 0x139   : > { %2826 = shalt.err (!%p2823_p10)
}
 0x13a   : > { %s4451_s12 = smov 4   ;;  %s4452_s20 = smov 64  }
 0x13b   : > { %2380 = dma.hbm_to_vmem [thread:$0]  (%p4448_p2), %s3767_s14, 256, %s3770_s3, %s3636_s1, %s4452_s20, %s4452_s20, %s4451_s12  }
 0x13c   : > { %s4453_s7 = sld [smem:[#allocation68_spill]]  ;;  %s686_s4 = scalar_lea.vmem [#allocation14], %s3667_s28 }
 0x13d   : > { %s693_s0 = sshll.u32 %s686_s4, 4  ;;  %s694_s0 = int_to_ptr.vmem [resolvable:$true] %s693_s0 }
 0x142   : > { %s3801_s23 = scalar_lea.hbm %s4453_s7, %s3736_s26  ;;  %s2831_s14 = scalar_lea.hbm %s4453_s7, 32 }
 0x143   : > { %s2827_s16 = scalar_lea.hbm %s3801_s23, 16  ;;  %p2832_p1 = scmp.lt.u32.totalorder %s3801_s23, %s4453_s7 }
 0x144   : > { %p2828_p3 = scmp.ne.s32.totalorder %s3801_s23, %s2827_s16  ;;  %p2833_p4 = scmp.lt.u32.totalorder %s2831_s14, %s2827_s16 }
 0x145   : > { %p2835_p5 = scmp.lt.u32.totalorder %s2827_s16, %s3801_s23 }
 0x146   : > { %p2829_p13 = pnand %p2828_p3, %p4448_p2  ;;  %p2834_p11 = por %p2833_p4, %p2832_p1 }
 0x148   : > { %p2830_p12 = pneg %p2829_p13  ;;  %p2836_p0 = por %p2835_p5, %p2834_p11 }
 0x14a   : > { %p2837_p8 = pnand %p2836_p0, %p2830_p12 }
 0x14c   : > { %2840 = shalt.err (!%p2837_p8)
}
 0x14d   : > { %s2841_s15 = scalar_lea.vmem %s694_s0, 16  ;;  %s3284_s4 = smov [#allocation14]  }
 0x14e   : > { %p2842_p6 = scmp.ne.s32.totalorder %s694_s0, %s2841_s15  ;;  %s2845_s6 = sshll.u32 %s3284_s4, 4  ;;  %s2846_s6 = int_to_ptr.vmem [resolvable:$false] %s2845_s6 }
 0x14f   : > { %s2847_s5 = scalar_lea.vmem %s2846_s6, 32  ;;  %p2848_p10 = scmp.lt.s32.totalorder %s694_s0, %s2846_s6 }
 0x150   : > { %p2843_p9 = pnand %p2842_p6, %p4448_p2  ;;  %p2849_p3 = scmp.lt.s32.totalorder %s2847_s5, %s2841_s15 }
 0x152   : > { %p2844_p7 = pneg %p2843_p9  ;;  %p2850_p13 = por %p2849_p3, %p2848_p10 }
 0x154   : > { %p2851_p1 = pnand %p2850_p13, %p2844_p7 }
 0x156   : > { %2854 = shalt.err (!%p2851_p1)
}
 0x157   : > { %2381 = dma.hbm_to_vmem [thread:$0]  (%p4448_p2), %s3801_s23, 16, %s694_s0, %s3671_s24  }
 0x158   : > { %s4454_s8 = sld [smem:[#allocation69_spill]]  ;;  %s703_s6 = scalar_lea.vmem [#allocation15], %s3667_s28 }
 0x159   : > { %s710_s3 = sshll.u32 %s703_s6, 4  ;;  %s711_s3 = int_to_ptr.vmem [resolvable:$true] %s710_s3 }
 0x15e   : > { %s3826_s14 = scalar_lea.hbm %s4454_s8, %s3736_s26  ;;  %s2859_s23 = scalar_lea.hbm %s4454_s8, 32 }
 0x15f   : > { %s2855_s27 = scalar_lea.hbm %s3826_s14, 16  ;;  %p2860_p5 = scmp.lt.u32.totalorder %s3826_s14, %s4454_s8 }
 0x160   : > { %p2856_p12 = scmp.ne.s32.totalorder %s3826_s14, %s2855_s27  ;;  %p2861_p0 = scmp.lt.u32.totalorder %s2859_s23, %s2855_s27 }
 0x161   : > { %p2863_p6 = scmp.lt.u32.totalorder %s2855_s27, %s3826_s14 }
 0x162   : > { %p2857_p4 = pnand %p2856_p12, %p4448_p2  ;;  %p2862_p8 = por %p2861_p0, %p2860_p5 }
 0x164   : > { %p2858_p11 = pneg %p2857_p4  ;;  %p2864_p9 = por %p2863_p6, %p2862_p8 }
 0x166   : > { %p2865_p7 = pnand %p2864_p9, %p2858_p11 }
 0x168   : > { %2868 = shalt.err (!%p2865_p7)
}
 0x169   : > { %s2869_s16 = scalar_lea.vmem %s711_s3, 16  ;;  %s3285_s13 = smov [#allocation15]  }
 0x16a   : > { %p2870_p10 = scmp.ne.s32.totalorder %s711_s3, %s2869_s16  ;;  %s2873_s6 = sshll.u32 %s3285_s13, 4  ;;  %s2874_s6 = int_to_ptr.vmem [resolvable:$false] %s2873_s6 }
 0x16b   : > { %s2875_s15 = scalar_lea.vmem %s2874_s6, 32  ;;  %p2876_p1 = scmp.lt.s32.totalorder %s711_s3, %s2874_s6 }
 0x16c   : > { %p2871_p3 = pnand %p2870_p10, %p4448_p2  ;;  %p2877_p12 = scmp.lt.s32.totalorder %s2875_s15, %s2869_s16 }
 0x16e   : > { %p2872_p13 = pneg %p2871_p3  ;;  %p2878_p4 = por %p2877_p12, %p2876_p1 }
 0x170   : > { %p2879_p0 = pnand %p2878_p4, %p2872_p13 }
 0x172   : > { %2882 = shalt.err (!%p2879_p0)
}
 0x173   : > { %2382 = dma.hbm_to_vmem [thread:$0]  (%p4448_p2), %s3826_s14, 16, %s711_s3, %s3636_s1  }
 0x174   : > { %s3851_s23 = scalar_lea.hbm %s4348_s9, %s3736_s26  ;;  %s720_s0 = scalar_lea.vmem [#allocation16], %s3667_s28 }
 0x175   : > { %s727_s5 = sshll.u32 %s720_s0, 4  ;;  %s2883_s16 = scalar_lea.hbm %s3851_s23, 16  ;;  %s728_s5 = int_to_ptr.vmem [resolvable:$true] %s727_s5 }
 0x176   : > { %p2884_p11 = scmp.ne.s32.totalorder %s3851_s23, %s2883_s16  ;;  %s2887_s14 = scalar_lea.hbm %s4348_s9, 32 }
 0x177   : > { %p2888_p6 = scmp.lt.u32.totalorder %s3851_s23, %s4348_s9  ;;  %p2889_p9 = scmp.lt.u32.totalorder %s2887_s14, %s2883_s16 }
 0x178   : > { %p2885_p5 = pnand %p2884_p11, %p4448_p2  ;;  %p2891_p10 = scmp.lt.u32.totalorder %s2883_s16, %s3851_s23 }
 0x179   : > { %p2890_p7 = por %p2889_p9, %p2888_p6 }
 0x17a   : > { %p2886_p8 = pneg %p2885_p5 }
 0x17b   : > { %p2892_p3 = por %p2891_p10, %p2890_p7 }
 0x17d   : > { %p2893_p13 = pnand %p2892_p3, %p2886_p8 }
 0x17f   : > { %2896 = shalt.err (!%p2893_p13)
}
 0x180   : > { %s2897_s27 = scalar_lea.vmem %s728_s5, 16  ;;  %s3286_s4 = smov [#allocation16]  }
 0x181   : > { %p2898_p1 = scmp.ne.s32.totalorder %s728_s5, %s2897_s27  ;;  %s2901_s0 = sshll.u32 %s3286_s4, 4  ;;  %s2902_s0 = int_to_ptr.vmem [resolvable:$false] %s2901_s0 }
 0x182   : > { %s2903_s13 = scalar_lea.vmem %s2902_s0, 32  ;;  %p2904_p0 = scmp.lt.s32.totalorder %s728_s5, %s2902_s0 }
 0x183   : > { %p2899_p12 = pnand %p2898_p1, %p4448_p2  ;;  %p2905_p11 = scmp.lt.s32.totalorder %s2903_s13, %s2897_s27 }
 0x185   : > { %p2900_p4 = pneg %p2899_p12  ;;  %p2906_p5 = por %p2905_p11, %p2904_p0 }
 0x187   : > { %p2907_p6 = pnand %p2906_p5, %p2900_p4 }
 0x189   : > { %2910 = shalt.err (!%p2907_p6)
}
 0x18a   : > { %2383 = dma.hbm_to_vmem [thread:$0]  (%p4448_p2), %s3851_s23, 16, %s728_s5, %s3671_s24  }
 0x18b   : > { %s4455_s14 = sld [smem:[#allocation70_spill]]  ;;  %s738_s15 = scalar_lea.vmem [#allocation17], %s3696_s10 }
 0x18c   : > { %s745_s27 = sshll.u32 %s738_s15, 4  ;;  %s3879_s27 = int_to_ptr.vmem [resolvable:$true] %s745_s27 }
 0x191   : > { %s3876_s3 = scalar_lea.hbm %s4455_s14, %s3699_s30  ;;  %s2915_s5 = scalar_lea.hbm %s4455_s14, 512 }
 0x192   : > { %s2911_s4 = scalar_lea.hbm %s3876_s3, 256  ;;  %p2916_p10 = scmp.lt.u32.totalorder %s3876_s3, %s4455_s14 }
 0x193   : > { %p2912_p8 = scmp.ne.s32.totalorder %s3876_s3, %s2911_s4  ;;  %p2917_p3 = scmp.lt.u32.totalorder %s2915_s5, %s2911_s4 }
 0x194   : > { %p2919_p1 = scmp.lt.u32.totalorder %s2911_s4, %s3876_s3 }
 0x195   : > { %p2913_p9 = pnand %p2912_p8, %p4448_p2  ;;  %p2918_p13 = por %p2917_p3, %p2916_p10 }
 0x197   : > { %p2914_p7 = pneg %p2913_p9  ;;  %p2920_p12 = por %p2919_p1, %p2918_p13 }
 0x199   : > { %p2921_p4 = pnand %p2920_p12, %p2914_p7 }
 0x19b   : > { %2924 = shalt.err (!%p2921_p4)
}
 0x19c   : > { %s2925_s10 = scalar_lea.vmem %s3879_s27, 256  ;;  %s3287_s16 = smov [#allocation17]  }
 0x19d   : > { %p2926_p0 = scmp.ne.s32.totalorder %s3879_s27, %s2925_s10  ;;  %s2929_s6 = sshll.u32 %s3287_s16, 4  ;;  %s2930_s6 = int_to_ptr.vmem [resolvable:$false] %s2929_s6 }
 0x19e   : > { %s2931_s15 = scalar_lea.vmem %s2930_s6, 512  ;;  %p2932_p6 = scmp.lt.s32.totalorder %s3879_s27, %s2930_s6 }
 0x19f   : > { %p2927_p11 = pnand %p2926_p0, %p4448_p2  ;;  %p2933_p8 = scmp.lt.s32.totalorder %s2931_s15, %s2925_s10 }
 0x1a1   : > { %p2928_p5 = pneg %p2927_p11  ;;  %p2934_p9 = por %p2933_p8, %p2932_p6 }
 0x1a3   : > { %p2935_p10 = pnand %p2934_p9, %p2928_p5 }
 0x1a5   : > { %2938 = shalt.err (!%p2935_p10)
}
 0x1a6   : > { %2384 = dma.hbm_to_vmem [thread:$0]  (%p4448_p2), %s3876_s3, 256, %s3879_s27, %s3636_s1, %s4452_s20, %s4452_s20, %s4451_s12  }
 0x1a7   : > { %s4456_s23 = sld [smem:[#allocation71_spill]]  ;;  %s758_s13 = scalar_lea.vmem [#allocation18], %s3667_s28 }
 0x1a8   : > { %s765_s30 = sshll.u32 %s758_s13, 4  ;;  %s766_s30 = int_to_ptr.vmem [resolvable:$true] %s765_s30 }
 0x1ad   : > { %s3910_s5 = scalar_lea.hbm %s4456_s23, %s3736_s26  ;;  %s2943_s27 = scalar_lea.hbm %s4456_s23, 32 }
 0x1ae   : > { %s2939_s16 = scalar_lea.hbm %s3910_s5, 16  ;;  %p2944_p1 = scmp.lt.u32.totalorder %s3910_s5, %s4456_s23 }
 0x1af   : > { %p2940_p7 = scmp.ne.s32.totalorder %s3910_s5, %s2939_s16  ;;  %p2945_p12 = scmp.lt.u32.totalorder %s2943_s27, %s2939_s16 }
 0x1b0   : > { %p2947_p0 = scmp.lt.u32.totalorder %s2939_s16, %s3910_s5 }
 0x1b1   : > { %p2941_p3 = pnand %p2940_p7, %p4448_p2  ;;  %p2946_p4 = por %p2945_p12, %p2944_p1 }
 0x1b3   : > { %p2942_p13 = pneg %p2941_p3  ;;  %p2948_p11 = por %p2947_p0, %p2946_p4 }
 0x1b5   : > { %p2949_p5 = pnand %p2948_p11, %p2942_p13 }
 0x1b7   : > { %2952 = shalt.err (!%p2949_p5)
}
 0x1b8   : > { %s2953_s0 = scalar_lea.vmem %s766_s30, 16  ;;  %s3288_s13 = smov [#allocation18]  }
 0x1b9   : > { %p2954_p6 = scmp.ne.s32.totalorder %s766_s30, %s2953_s0  ;;  %s2957_s10 = sshll.u32 %s3288_s13, 4  ;;  %s2958_s10 = int_to_ptr.vmem [resolvable:$false] %s2957_s10 }
 0x1ba   : > { %s2959_s6 = scalar_lea.vmem %s2958_s10, 32  ;;  %p2960_p10 = scmp.lt.s32.totalorder %s766_s30, %s2958_s10 }
 0x1bb   : > { %p2955_p8 = pnand %p2954_p6, %p4448_p2  ;;  %p2961_p7 = scmp.lt.s32.totalorder %s2959_s6, %s2953_s0 }
 0x1bd   : > { %p2956_p9 = pneg %p2955_p8  ;;  %p2962_p3 = por %p2961_p7, %p2960_p10 }
 0x1bf   : > { %p2963_p1 = pnand %p2962_p3, %p2956_p9 }
 0x1c1   : > { %2966 = shalt.err (!%p2963_p1)
}
 0x1c2   : > { %2385 = dma.hbm_to_vmem [thread:$0]  (%p4448_p2), %s3910_s5, 16, %s766_s30, %s3671_s24  }
 0x1c3   : > { %s2269_s16 = sshll.u32 %s3261_s21, 9  ;;  %s4457_s15 = sld [smem:[#allocation72_spill]] }
 0x1c4   : > { %s4458_s13 = sshll.u32 %s3667_s28, 5 }
 0x1c5   : > { %s776_s10 = scalar_lea.vmem [#allocation19], %s4458_s13 }
 0x1c6   : > { %s783_s0 = sshll.u32 %s776_s10, 4  ;;  %s3940_s0 = int_to_ptr.vmem [resolvable:$true] %s783_s0 }
 0x1c9   : > { %s3936_s4 = scalar_lea.hbm %s4457_s15, %s2269_s16  ;;  %s2971_s3 = scalar_lea.hbm %s4457_s15, 1024 }
 0x1ca   : > { %s2967_s6 = scalar_lea.hbm %s3936_s4, 512  ;;  %p2972_p0 = scmp.lt.u32.totalorder %s3936_s4, %s4457_s15 }
 0x1cb   : > { %p2968_p13 = scmp.ne.s32.totalorder %s3936_s4, %s2967_s6  ;;  %p2973_p11 = scmp.lt.u32.totalorder %s2971_s3, %s2967_s6 }
 0x1cc   : > { %p2975_p6 = scmp.lt.u32.totalorder %s2967_s6, %s3936_s4 }
 0x1cd   : > { %p2969_p12 = pnand %p2968_p13, %p4448_p2  ;;  %p2974_p5 = por %p2973_p11, %p2972_p0 }
 0x1cf   : > { %p2970_p4 = pneg %p2969_p12  ;;  %p2976_p8 = por %p2975_p6, %p2974_p5 }
 0x1d1   : > { %p2977_p9 = pnand %p2976_p8, %p2970_p4 }
 0x1d3   : > { %2980 = shalt.err (!%p2977_p9)
}
 0x1d4   : > { %s2981_s13 = scalar_lea.vmem %s3940_s0, 512  ;;  %s3289_s10 = smov [#allocation19]  }
 0x1d5   : > { %p2982_p10 = scmp.ne.s32.totalorder %s3940_s0, %s2981_s13  ;;  %s2985_s5 = sshll.u32 %s3289_s10, 4  ;;  %s2986_s5 = int_to_ptr.vmem [resolvable:$false] %s2985_s5 }
 0x1d6   : > { %s2987_s30 = scalar_lea.vmem %s2986_s5, 1024  ;;  %p2988_p1 = scmp.lt.s32.totalorder %s3940_s0, %s2986_s5 }
 0x1d7   : > { %p2983_p7 = pnand %p2982_p10, %p4448_p2  ;;  %p2989_p13 = scmp.lt.s32.totalorder %s2987_s30, %s2981_s13 }
 0x1d9   : > { %p2984_p3 = pneg %p2983_p7  ;;  %p2990_p12 = por %p2989_p13, %p2988_p1 }
 0x1db   : > { %p2991_p0 = pnand %p2990_p12, %p2984_p3 }
 0x1dd   : > { %2994 = shalt.err (!%p2991_p0)
}
 0x1de   : > { %2386 = dma.hbm_to_vmem [thread:$0]  (%p4448_p2), %s3936_s4, 512, %s3940_s0, %s3636_s1, %s4452_s20, %s4452_s20, %s4451_s12  }
 0x1df   : > { %s4459_s16 = sld [smem:[#allocation73_spill]]  ;;  %s796_s13 = scalar_lea.vmem [#allocation20], %s3667_s28 }
 0x1e0   : > { %s803_s10 = sshll.u32 %s796_s13, 4  ;;  %s804_s10 = int_to_ptr.vmem [resolvable:$true] %s803_s10 }
 0x1e5   : > { %s3971_s27 = scalar_lea.hbm %s4459_s16, %s3736_s26  ;;  %s2999_s12 = scalar_lea.hbm %s4459_s16, 32 }
 0x1e6   : > { %s2995_s5 = scalar_lea.hbm %s3971_s27, 16  ;;  %p3000_p6 = scmp.lt.u32.totalorder %s3971_s27, %s4459_s16 }
 0x1e7   : > { %p2996_p4 = scmp.ne.s32.totalorder %s3971_s27, %s2995_s5  ;;  %p3001_p8 = scmp.lt.u32.totalorder %s2999_s12, %s2995_s5 }
 0x1e8   : > { %p3003_p10 = scmp.lt.u32.totalorder %s2995_s5, %s3971_s27 }
 0x1e9   : > { %p2997_p11 = pnand %p2996_p4, %p4448_p2  ;;  %p3002_p9 = por %p3001_p8, %p3000_p6 }
 0x1eb   : > { %p2998_p5 = pneg %p2997_p11  ;;  %p3004_p7 = por %p3003_p10, %p3002_p9 }
 0x1ed   : > { %p3005_p3 = pnand %p3004_p7, %p2998_p5 }
 0x1ef   : > { %3008 = shalt.err (!%p3005_p3)
}
 0x1f0   : > { %s3009_s0 = scalar_lea.vmem %s804_s10, 16  ;;  %s3290_s6 = smov [#allocation20]  }
 0x1f1   : > { %p3010_p1 = scmp.ne.s32.totalorder %s804_s10, %s3009_s0  ;;  %s3013_s3 = sshll.u32 %s3290_s6, 4  ;;  %s3014_s3 = int_to_ptr.vmem [resolvable:$false] %s3013_s3 }
 0x1f2   : > { %s3015_s7 = scalar_lea.vmem %s3014_s3, 32  ;;  %p3016_p0 = scmp.lt.s32.totalorder %s804_s10, %s3014_s3 }
 0x1f3   : > { %p3011_p13 = pnand %p3010_p1, %p4448_p2  ;;  %p3017_p4 = scmp.lt.s32.totalorder %s3015_s7, %s3009_s0 }
 0x1f5   : > { %p3012_p12 = pneg %p3011_p13  ;;  %p3018_p11 = por %p3017_p4, %p3016_p0 }
 0x1f7   : > { %p3019_p6 = pnand %p3018_p11, %p3012_p12 }
 0x1f9   : > { %3022 = shalt.err (!%p3019_p6)
}
 0x1fa   : > { %2387 = dma.hbm_to_vmem [thread:$0]  (%p4448_p2), %s3971_s27, 16, %s804_s10, %s3671_s24  }
 0x1fb   : > { %s4460_s30 = sld [smem:[#allocation74_spill]]  ;;  %s813_s4 = scalar_lea.vmem [#allocation21], %s3667_s28 }
 0x1fc   : > { %s820_s0 = sshll.u32 %s813_s4, 4  ;;  %s821_s0 = int_to_ptr.vmem [resolvable:$true] %s820_s0 }
 0x201   : > { %s4461_s12 = smov %s4460_s30  ;;  %s3996_s20 = scalar_lea.hbm %s4460_s30, %s3736_s26 }
 0x202   : > { %s3023_s6 = scalar_lea.hbm %s3996_s20, 16  ;;  %s3027_s27 = scalar_lea.hbm %s4461_s12, 32 }
 0x203   : > { %p3024_p5 = scmp.ne.s32.totalorder %s3996_s20, %s3023_s6  ;;  %p3028_p10 = scmp.lt.u32.totalorder %s3996_s20, %s4461_s12 }
 0x204   : > { %p3029_p7 = scmp.lt.u32.totalorder %s3027_s27, %s3023_s6  ;;  %p3031_p1 = scmp.lt.u32.totalorder %s3023_s6, %s3996_s20 }
 0x205   : > { %p3025_p8 = pnand %p3024_p5, %p4448_p2 }
 0x206   : > { %p3030_p3 = por %p3029_p7, %p3028_p10 }
 0x207   : > { %p3026_p9 = pneg %p3025_p8 }
 0x208   : > { %p3032_p13 = por %p3031_p1, %p3030_p3 }
 0x20a   : > { %p3033_p12 = pnand %p3032_p13, %p3026_p9 }
 0x20c   : > { %3036 = shalt.err (!%p3033_p12)
}
 0x20d   : > { %s3037_s5 = scalar_lea.vmem %s821_s0, 16  ;;  %s3291_s30 = smov [#allocation21]  }
 0x20e   : > { %p3038_p0 = scmp.ne.s32.totalorder %s821_s0, %s3037_s5  ;;  %s3041_s4 = sshll.u32 %s3291_s30, 4  ;;  %s3042_s4 = int_to_ptr.vmem [resolvable:$false] %s3041_s4 }
 0x20f   : > { %s3043_s3 = scalar_lea.vmem %s3042_s4, 32  ;;  %p3044_p6 = scmp.lt.s32.totalorder %s821_s0, %s3042_s4 }
 0x210   : > { %p3039_p4 = pnand %p3038_p0, %p4448_p2  ;;  %p3045_p5 = scmp.lt.s32.totalorder %s3043_s3, %s3037_s5 }
 0x212   : > { %p3040_p11 = pneg %p3039_p4  ;;  %p3046_p8 = por %p3045_p5, %p3044_p6 }
 0x214   : > { %p3047_p7 = pnand %p3046_p8, %p3040_p11 }
 0x216   : > { %3050 = shalt.err (!%p3047_p7)
}
 0x217   : > { %2388 = dma.hbm_to_vmem [thread:$0]  (%p4448_p2), %s3996_s20, 16, %s821_s0, %s3636_s1  }
 0x218   : > { %s4462_s27 = sld [smem:[#allocation75_spill]]  ;;  %s830_s5 = scalar_lea.vmem [#allocation22], %s3667_s28 }
 0x219   : > { %s837_s30 = sshll.u32 %s830_s5, 4  ;;  %s838_s30 = int_to_ptr.vmem [resolvable:$true] %s837_s30 }
 0x21e   : > { %s4463_s10 = smov %s4462_s27  ;;  %s4021_s13 = scalar_lea.hbm %s4462_s27, %s3736_s26 }
 0x21f   : > { %s3051_s4 = scalar_lea.hbm %s4021_s13, 16  ;;  %s3055_s1 = scalar_lea.hbm %s4463_s10, 32 }
 0x220   : > { %p3052_p9 = scmp.ne.s32.totalorder %s4021_s13, %s3051_s4  ;;  %p3056_p1 = scmp.lt.u32.totalorder %s4021_s13, %s4463_s10 }
 0x221   : > { %p3057_p13 = scmp.lt.u32.totalorder %s3055_s1, %s3051_s4  ;;  %p3059_p0 = scmp.lt.u32.totalorder %s3051_s4, %s4021_s13 }
 0x222   : > { %p3053_p10 = pnand %p3052_p9, %p4448_p2 }
 0x223   : > { %p3058_p12 = por %p3057_p13, %p3056_p1 }
 0x224   : > { %p3054_p3 = pneg %p3053_p10 }
 0x225   : > { %p3060_p4 = por %p3059_p0, %p3058_p12 }
 0x227   : > { %p3061_p11 = pnand %p3060_p4, %p3054_p3 }
 0x229   : > { %3064 = shalt.err (!%p3061_p11)
}
 0x22a   : > { %s3065_s28 = scalar_lea.vmem %s838_s30, 16  ;;  %s3292_s26 = smov [#allocation22]  }
 0x22b   : > { %p3066_p6 = scmp.ne.s32.totalorder %s838_s30, %s3065_s28  ;;  %s3069_s6 = sshll.u32 %s3292_s26, 4  ;;  %s3070_s6 = int_to_ptr.vmem [resolvable:$false] %s3069_s6 }
 0x22c   : > { %s3071_s8 = scalar_lea.vmem %s3070_s6, 32  ;;  %p3072_p7 = scmp.lt.s32.totalorder %s838_s30, %s3070_s6 }
 0x22d   : > { %p3067_p5 = pnand %p3066_p6, %p4448_p2  ;;  %p3073_p9 = scmp.lt.s32.totalorder %s3071_s8, %s3065_s28 }
 0x22f   : > { %p3068_p8 = pneg %p3067_p5  ;;  %p3074_p10 = por %p3073_p9, %p3072_p7 }
 0x231   : > { %p3075_p1 = pnand %p3074_p10, %p3068_p8 }
 0x233   : > { %3078 = shalt.err (!%p3075_p1)
}
 0x234   : > { %2389 = dma.hbm_to_vmem [thread:$0]  (%p4448_p2), %s4021_s13, 16, %s838_s30, %s3671_s24  }
 0x235 PF: > { %s4464_s7 = sld [smem:[#allocation60_spill]] }
 0x23b   : > { %p4465_p3 = scmp.ne.s32.totalorder %s4464_s7, 0 }
 0x23c   : > { %s4466_s27 = sld [smem:[#allocation51_spill]] (!%p4465_p3)  ;;  %s4468_s4 = sld [smem:[#allocation54_spill]] (!%p4465_p3) }
 0x23d   : > { %846 = sbr.rel (%p4465_p3) target bundleno = 3610 (0xe1a), region = 92  ;;  %s4467_s5 = sld [smem:[#allocation48_spill]] (!%p4465_p3) }
 0x242   : > { %s848_s3 = sand.u32 (!%p4465_p3), 1, %s4466_s27   ;;  %p4469_p13 = scmp.ne.s32.totalorder (!%p4465_p3), %s4468_s4, 0 }
 0x243   : > { %s4046_s1 = sand.u32 (!%p4465_p3), 1, %s4467_s5   ;;  %s4049_s0 = scalar_lea.sflag (!%p4465_p3), [#allocation4], %s848_s3 }
 0x244   : > { %s2219_s20 = sshll.u32 %s4046_s1, 3 }
 0x245   : > { %s4051_s28 = scalar_lea.vmem [#allocation3], %s2219_s20 }
 0x246   : > { %3152 = dma.done.wait (%p4469_p13), %s4049_s0, 128  }
 0x247   : > { %3154 = vsyncadd (%p4469_p13), %s4049_s0, 4294967168  ;;  %s4059_s11 = scalar_lea.sflag [#allocation7], %s848_s3  ;;  %s860_s24 = scalar_lea.vmem [#allocation6], %s4046_s1 }
 0x248   : > { %3156 = dma.done.wait (%p4469_p13), %s4059_s11, 16  }
 0x249   : > { %3158 = vsyncadd (%p4469_p13), %s4059_s11, 4294967280  ;;  %p4470_p2 = scmp.eq.s32.totalorder %s4466_s27, 0 }
 0x24b   : > { %3160 = dma.done.wait (%p4470_p2), [#allocation7], 16   ;;  %p4471_p12 = pmov %p4470_p2 }
 0x24c   : > { %p4472_p0 = pmov %p4470_p2 }
 0x24d   : > { %3162 = vsyncadd (%p4471_p12), [#allocation7], 4294967280 }
 0x24e   : > { %3164 = dma.done.wait (%p4472_p0), [#allocation10], 16   ;;  %p4473_p4 = pmov %p4472_p0 }
 0x24f   : > { %s4474_s13 = sld [smem:[#allocation46_spill]]  ;;  %s4475_s30 = sld [smem:[#allocation57_spill]] }
 0x250   : > { %3166 = vsyncadd (%p4473_p4), [#allocation10], 4294967280 }
 0x255   : > { %s4077_s26 = sand.u32 1, %s4474_s13   ;;  %p4476_p11 = scmp.ne.s32.totalorder %s4475_s30, 0 }
 0x256   : > { %s4080_s6 = sshll.u32 %s4077_s26, 4 }
 0x257   : > { %s877_s8 = scalar_lea.vmem [#allocation11], %s4080_s6 }
 0x258   : > { %3168 = dma.done.wait (%p4476_p11), %s4049_s0, 256  }
 0x259   : > { %3170 = vsyncadd (%p4476_p11), %s4049_s0, 4294967040  ;;  %s885_s7 = scalar_lea.vmem [#allocation12], %s4077_s26 }
 0x25a   : > { %3172 = dma.done.wait (%p4476_p11), %s4059_s11, 16  }
 0x25b   : > { %3174 = vsyncadd (%p4476_p11), %s4059_s11, 4294967280  ;;  %s894_s5 = scalar_lea.vmem [#allocation13], %s4080_s6 }
 0x25c   : > { %3176 = dma.done.wait (%p4476_p11), %s4049_s0, 256  }
 0x25d   : > { %3178 = vsyncadd (%p4476_p11), %s4049_s0, 4294967040  ;;  %s902_s4 = scalar_lea.vmem [#allocation14], %s4077_s26 }
 0x25e   : > { %3180 = dma.done.wait (%p4476_p11), %s4059_s11, 16  }
 0x25f   : > { %3182 = vsyncadd (%p4476_p11), %s4059_s11, 4294967280 }
 0x260   : > { %3184 = dma.done.wait (%p4476_p11), %s4049_s0, 16  }
 0x261   : > { %3186 = vsyncadd (%p4476_p11), %s4049_s0, 4294967280 }
 0x262   : > { %3188 = dma.done.wait (%p4476_p11), %s4059_s11, 16  }
 0x263   : > { %3190 = vsyncadd (%p4476_p11), %s4059_s11, 4294967280 }
 0x264   : > { %3192 = dma.done.wait (%p4476_p11), %s4049_s0, 256  }
 0x265   : > { %3194 = vsyncadd (%p4476_p11), %s4049_s0, 4294967040 }
 0x266   : > { %3196 = dma.done.wait (%p4476_p11), %s4059_s11, 16  }
 0x267   : > { %3198 = vsyncadd (%p4476_p11), %s4059_s11, 4294967280  ;;  %s2225_s3 = sshll.u32 %s4077_s26, 5 }
 0x268   : > { %s4139_s13 = scalar_lea.vmem [#allocation19], %s2225_s3 }
 0x269   : > { %3200 = dma.done.wait (%p4476_p11), %s4049_s0, 512  }
 0x26a   : > { %3202 = vsyncadd (%p4476_p11), %s4049_s0, 4294966784 }
 0x26b   : > { %3204 = dma.done.wait (%p4476_p11), %s4059_s11, 16  }
 0x26c   : > { %3206 = vsyncadd (%p4476_p11), %s4059_s11, 4294967280  ;;  %s960_s3 = scalar_lea.vmem [#allocation21], %s4077_s26 }
 0x26d   : > { %3208 = dma.done.wait (%p4476_p11), %s4049_s0, 16  }
 0x26e   : > { %3210 = vsyncadd (%p4476_p11), %s4049_s0, 4294967280 }
 0x26f   : > { %3212 = dma.done.wait (%p4476_p11), %s4059_s11, 16  }
 0x270   : > { %3214 = vsyncadd (%p4476_p11), %s4059_s11, 4294967280  ;;  %p4477_p6 = pmov %p4472_p0 }
 0x271   : > { %p4478_p5 = pmov %p4472_p0 }
 0x272   : > { %3216 = dma.done.wait (%p4477_p6), [#allocation10], 256  }
 0x273   : > { %3218 = vsyncadd (%p4478_p5), [#allocation10], 4294967040  ;;  %p4479_p8 = pmov %p4472_p0 }
 0x274   : > { %p4480_p7 = pmov %p4472_p0 }
 0x275   : > { %3220 = dma.done.wait (%p4479_p8), [#allocation25], 16  }
 0x276   : > { %3222 = vsyncadd (%p4480_p7), [#allocation25], 4294967280  ;;  %s1083_s0 = scalar_lea.vmem [#allocation26], %s4046_s1  ;;  %s4481_s20 = sld [smem:[#allocation49_spill]] }
 0x27c   : > { %p2228_p9 = scmp.ne.s32.totalorder %s4481_s20, 0 }
 0x27d   : > { %v1089_v0 = vld [vmem:[%s4051_s28] sm:$0xff] (!%p2228_p9)  ;;  %vm1092_vm0 = vcmask (!%p2228_p9), 261120   ;;  %v2229_v11 = vld [vmem:[#allocation8] ss:$0 sm:$0xff] (!%p2228_p9)  ;;  %v2230_v13 = vld [vmem:[#allocation9] ss:$0 sm:$0xff] (!%p2228_p9) }
 0x27e   : > { %1088 = sbr.rel (%p2228_p9) target bundleno = 952 (0x3b8), region = 168  ;;  %v1093_v1 = vsel (!%p2228_p9), %vm1092_vm0, %v1089_v0, 0.0 }
 0x27f   : > { %1094 = vadd.xlane.f32.xlu0 (!%p2228_p9), %v1093_v1 }
 0x30c   : > { %v1095_v2 = vpop.xlane.xlu0 %1094 }
 0x30d   : > { %v1097_v3 = vmul.f32 0.03125, %v1095_v2 }
 0x30f   : > { %v1098_v4 = vsub.f32 %v1089_v0, %v1097_v3 }
 0x311   : > { %v1099_v5 = vmul.f32 %v1098_v4, %v1098_v4 }
 0x313   : > { %v1100_v6 = vsel %vm1092_vm0, %v1099_v5, 0.0 }
 0x314   : > { %1101 = vadd.xlane.f32.xlu0 %v1100_v6 }
 0x3a1   : > { %v1102_v7 = vpop.xlane.xlu0 %1101 }
 0x3a2   : > { %v1103_v8 = vmul.f32 0.03125, %v1102_v7 }
 0x3a4   : > { %v1104_v9 = vadd.f32 1e-12, %v1103_v8 }
 0x3a6   : > { %2545 = vrsqrt.f32 %v1104_v9 }
 0x3b0   : > { %v2546_v10 = vpop.eup %2545 }
 0x3b1   : > { %v1106_v12 = vmul.f32 %v2546_v10, %v1098_v4 }
 0x3b3   : > { %v1113_v14 = vmul.f32 %v2229_v11, %v1106_v12 }
 0x3b5   : > { %v1120_v15 = vadd.f32 %v2230_v13, %v1113_v14 }
 0x3b7   : > { %1121 = vst.msk [vmem:[#allocation2] sm:$0xff] %vm1092_vm0, %v1120_v15 }
 0x3b8 PF: > { %v2547_v16 = vld [vmem:[%s877_s8] sm:$0xff]   ;;  %v3293_v17 = vmov 0.0   ;;  %v2548_v18 = vld [vmem:[%s877_s8 + $0x8] sm:$0xff]   ;;  %vm3294_vm1 = vmmov 0   ;;  %vm1147_vm2 = vcmask 261120   ;;  %s3295_s27 = smov 112  }
 0x3b9   : > { %2296 = vmatprep.subr.bf16.mxu1 %v3293_v17  ;;  %2310 = vmatprep.subr.bf16.mxu0 %v3293_v17  ;;  %v2231_v21 = vld [vmem:[%s885_s7] ss:$0 sm:$0xff]  ;;  %s3296_s28 = smov 96   ;;  %s3297_s11 = smov 80   ;;  %vm1206_vm3 = vcmask 130048   ;;  %vm1253_vm4 = vcmask 64512  }
 0x3ba   : > { %2297 = vmatpush3.bf16.msra.mxu1 %v2547_v16  ;;  %2300 = vmatprep.mubr.msk.bf16.mxu1 %vm3294_vm1, %v3293_v17  ;;  %v2235_v33 = vld [vmem:[%s860_s24] ss:$0 sm:$0xff]  ;;  %s3298_s24 = smov 64   ;;  %s3299_s30 = smov 48   ;;  %vm1271_vm5 = vcmask 1043456   ;;  %v2550_v5 = vld [vmem:[%s894_s5 + $0x8] sm:$0xff]  }
 0x3bb   : > { %2298 = vmatprep.subr.bf16.mxu1 %v3293_v17  ;;  %2312 = vmatprep.mubr.msk.bf16.mxu0 %vm3294_vm1, %v3293_v17  ;;  %v2549_v4 = vld [vmem:[%s894_s5] sm:$0xff]   ;;  %s4482_s8 = scalar_lea.vmem [#allocation17], %s4080_s6  ;;  %s4484_s5 = scalar_lea.vmem [#allocation15], %s4077_s26  ;;  %vm1680_vm6 = vcmask 523264  }
 0x3bc   : > { %s4483_s7 = smov %s4482_s8  ;;  %s4486_s6 = scalar_lea.vmem [#allocation18], %s4077_s26 }
 0x3bd   : > { %s4487_s20 = scalar_lea.vmem [#allocation20], %s4077_s26 }
 0x3be   : > { %v4190_v19 = vld [vmem:[#allocation2] sm:$0xff]  ;;  %2299 = vmatpush3.bf16.msra.mxu1 %v2548_v18 }
 0x3bf   : > { %v1123_v20 = vpack.c.bf16 %v4190_v19, %v4190_v19  ;;  %2304 = vmatprep.subr.bf16.mxu1 %v3293_v17 }
 0x3c1   : > { %2301 = vmatmul.mubr.msk.bf16.vlgmr.msra.gmra.mrb[0].mxu1 %vm1147_vm2, %v1123_v20 }
 0x3c2   : > { %2306 = vmatprep.mubr.msk.bf16.mxu1 %vm3294_vm1, %v3293_v17 }
 0x494   : > { %v1185_v22 = vpop.f32.mrb[0].mxu1 }
 0x495   : > { %v1186_v23 = vadd.f32 %v2231_v21, %v1185_v22  ;;  %v2302_v24 = vpop.f32.mrb[1].mxu1 }
 0x496   : > { %v1188_v25 = vpop.f32.mrb[2].mxu1 }
 0x497   : > { %v1191_v26 = vpack.c.bf16 %v1186_v23, %v1186_v23  ;;  %v2303_v27 = vpop.f32.mrb[3].mxu1  ;;  %v2244_v23 = vld [vmem:[%s902_s4] ss:$0 sm:$0xff]  ;;  %s4485_s4 = scalar_lea.vmem [#allocation16], %s4077_s26 }
 0x499   : > { %1316 = vrot.lane.b32.xlu1 %v1191_v26, %s3295_s27  ;;  %1204 = vrot.lane.b32.xlu0 %v1191_v26, %s3296_s28  ;;  %s4489_s27 = sld [smem:[#allocation49_spill]] }
 0x49d   : > { %1318 = vrot.lane.b32.xlu0 %v1191_v26, %s3297_s11 }
 0x49f   : > { %p2259_p10 = scmp.ne.s32.totalorder %s4489_s27, 1 }
 0x4a0   : > { %vm3301_vm7 = vmmov (!%p2259_p10), 0   ;;  %vm1821_vm8 = vcmask (!%p2259_p10), 253952  }
 0x50b   : > { %v1205_v28 = vpop.permute.xlu0 %1204  ;;  %v1317_v32 = vpop.permute.xlu1 %1316 }
 0x50c   : > { %v1211_v29 = vsel %vm1206_vm3, %v1205_v28, 0 }
 0x50d   : > { %2305 = vmatpush3.bf16.xpose.msra.mxu1 %v1211_v29 }
 0x50e   : > { %2316 = vmatprep.subr.bf16.mxu1 %v3293_v17 }
 0x50f   : > { %v1319_v30 = vpop.permute.xlu0 %1318 }
 0x510   : > { %v1324_v31 = vsel %vm1206_vm3, %v1319_v30, 0 }
 0x514   : > { %2307 = vmatmul.mubr.msk.bf16.vlgmr.msra.gmra.mrb[4].mxu1 %vm1206_vm3, %v1191_v26 }
 0x515   : > { %2317 = vmatpush3.bf16.xpose.msra.mxu1 %v1324_v31  ;;  %2318 = vmatprep.mubr.msk.bf16.mxu1 %vm3294_vm1, %v3293_v17 }
 0x516   : > { %2328 = vmatprep.subr.bf16.mxu1 %v3293_v17 }
 0x51c   : > { %2319 = vmatmul.mubr.msk.bf16.vlgmr.msra.gmra.mrb[8].mxu1 %vm1206_vm3, %v1317_v32 }
 0x51d   : > { %2330 = vmatprep.mubr.msk.bf16.mxu1 %vm3294_vm1, %v3293_v17  ;;  %2329 = vmatpush3.bf16.msra.mxu1 %v2550_v5 }
 0x51e   : > { %2340 = vmatprep.subr.bf16.mxu1 %v3293_v17 }
 0x5e7   : > { %v1247_v34 = vpop.f32.mrb[4].mxu1 }
 0x5e8   : > { %v1248_v35 = vadd.f32 %v2235_v33, %v1247_v34  ;;  %v2308_v36 = vpop.f32.mrb[5].mxu1 }
 0x5e9   : > { %v1250_v37 = vpop.f32.mrb[6].mxu1  ;;  %v2551_v36 = vld [vmem:[%s4482_s8] sm:$0xff]  }
 0x5ea   : > { %v2309_v38 = vpop.f32.mrb[7].mxu1  ;;  %v1254_v39 = vsel %vm1253_vm4, %v1248_v35, -inf  ;;  %v2552_v37 = vld [vmem:[%s4483_s7 + $0x8] sm:$0xff]  }
 0x5eb   : > { %1255 = vmax.xlane.f32.xlu1 %v1254_v39 }
 0x5ef   : > { %v1360_v40 = vpop.f32.mrb[8].mxu1 }
 0x5f0   : > { %v1361_v41 = vadd.f32 %v2235_v33, %v1360_v40  ;;  %v2320_v42 = vpop.f32.mrb[9].mxu1 }
 0x5f1   : > { %v1363_v43 = vpop.f32.mrb[10].mxu1 }
 0x5f2   : > { %v2321_v44 = vpop.f32.mrb[11].mxu1  ;;  %v1366_v45 = vsel %vm1253_vm4, %v1361_v41, -inf  ;;  %v2246_v43 = vld [vmem:[%s4485_s4] ss:$0 sm:$0xff] }
 0x5f3   : > { %1367 = vmax.xlane.f32.xlu0 %v1366_v45 }
 0x678   : > { %v1256_v46 = vpop.xlane.xlu1 %1255 }
 0x679   : > { %v1257_v47 = vsub.f32 %v1248_v35, %v1256_v46 }
 0x67b   : > { %v1258_v48 = vmul.f32 1.442695, %v1257_v47  ;;  %v2553_v47 = vld [vmem:[%s4139_s13] sm:$0xff]  }
 0x67d   : > { %2557 = vpow2.f32 %v1258_v48  ;;  %v2554_v48 = vld [vmem:[%s4139_s13 + $0x8] sm:$0xff]  }
 0x680   : > { %v1368_v49 = vpop.xlane.xlu0 %1367 }
 0x681   : > { %v1369_v50 = vsub.f32 %v1361_v41, %v1368_v49  ;;  %v2245_v41 = vld [vmem:[%s4484_s5] ss:$0 sm:$0xff]  ;;  %v2555_v49 = vld [vmem:[%s4139_s13 + $0x10] sm:$0xff]  }
 0x683   : > { %v1370_v51 = vmul.f32 1.442695, %v1369_v50  ;;  %v2556_v50 = vld [vmem:[%s4139_s13 + $0x18] sm:$0xff]   ;;  %s4488_s13 = scalar_lea.vmem [#allocation22], %s4077_s26 }
 0x685   : > { %2559 = vpow2.f32 %v1370_v51  ;;  %v2247_v51 = vld [vmem:[%s4486_s6] ss:$0 sm:$0xff] }
 0x687   : > { %v2558_v52 = vpop.eup %2557 }
 0x688   : > { %v1260_v53 = vsel %vm1253_vm4, %v2558_v52, 0.0 }
 0x689   : > { %1261 = vadd.xlane.f32.xlu0 %v1260_v53 }
 0x68f   : > { %v2560_v54 = vpop.eup %2559 }
 0x690   : > { %v1372_v55 = vsel %vm1253_vm4, %v2560_v54, 0.0 }
 0x691   : > { %1373 = vadd.xlane.f32.xlu1 %v1372_v55 }
 0x69f   : > { %1266 = vrot.lane.b32.xlu0 %v1191_v26, %s3298_s24 }
 0x6a2   : > { %1378 = vrot.lane.b32.xlu1 %v1191_v26, %s3299_s30 }
 0x716   : > { %v1262_v56 = vpop.xlane.xlu0 %1261 }
 0x717   : > { %2561 = vrcp.f32 %v1262_v56 }
 0x71a   : > { %v1267_v57 = vpop.permute.xlu0 %1266 }
 0x71b   : > { %v1273_v58 = vsel %vm1271_vm5, %v1267_v57, 0 }
 0x71c   : > { %2311 = vmatpush3.bf16.msra.mxu0 %v1273_v58 }
 0x71d   : > { %2322 = vmatprep.subr.bf16.mxu0 %v3293_v17 }
 0x71e   : > { %v1374_v59 = vpop.xlane.xlu1 %1373 }
 0x71f   : > { %2563 = vrcp.f32 %v1374_v59 }
 0x721   : > { %v2562_v60 = vpop.eup %2561 }
 0x722   : > { %v1264_v61 = vmul.f32 %v2562_v60, %v2558_v52  ;;  %v1379_v62 = vpop.permute.xlu1 %1378 }
 0x723   : > { %v1384_v0 = vsel %vm1271_vm5, %v1379_v62, 0 }
 0x724   : > { %v1265_v63 = vpack.c.bf16 %v1264_v61, %v1264_v61 }
 0x726   : > { %2313 = vmatmul.mubr.msk.bf16.vlgmr.msra.gmra.mrb[0].mxu0 %vm1253_vm4, %v1265_v63 }
 0x727   : > { %2323 = vmatpush3.bf16.msra.mxu0 %v1384_v0  ;;  %2324 = vmatprep.mubr.msk.bf16.mxu0 %vm3294_vm1, %v3293_v17 }
 0x728   : > { %2334 = vmatprep.subr.bf16.mxu0 %v3293_v17 }
 0x729   : > { %v2564_v1 = vpop.eup %2563 }
 0x72a   : > { %v1376_v2 = vmul.f32 %v2564_v1, %v2560_v54 }
 0x72c   : > { %v1377_v3 = vpack.c.bf16 %v1376_v2, %v1376_v2  ;;  %v2251_v2 = vld [vmem:[%s4487_s20] ss:$0 sm:$0xff] }
 0x72e   : > { %2325 = vmatmul.mubr.msk.bf16.vlgmr.msra.gmra.mrb[4].mxu0 %vm1253_vm4, %v1377_v3 }
 0x72f   : > { %2336 = vmatprep.mubr.msk.bf16.mxu0 %vm3294_vm1, %v3293_v17  ;;  %2335 = vmatpush3.bf16.msra.mxu0 %v2549_v4 }
 0x730   : > { %2348 = vmatprep.subr.bf16.mxu0 %v3293_v17 }
 0x7f9   : > { %v1309_v6 = vpop.f32.mrb[0].mxu0 }
 0x7fa   : > { %v1315_v7 = vpack.c.bf16 %v1309_v6, %v1309_v6  ;;  %v2314_v8 = vpop.f32.mrb[1].mxu0 }
 0x7fb   : > { %v1312_v9 = vpop.f32.mrb[2].mxu0 }
 0x7fc   : > { %v2315_v10 = vpop.f32.mrb[3].mxu0  ;;  %2337 = vmatmul.mubr.msk.bf16.vlgmr.msra.gmra.mrb[8].mxu0 %vm1206_vm3, %v1315_v7 }
 0x7fd   : > { %2356 = vmatprep.mubr.msk.bf16.mxu0 %vm3294_vm1, %v3293_v17  ;;  %2349 = vmatpush3.bf16.msra.mxu0 %v2553_v47 }
 0x7fe   : > { %2350 = vmatprep.subr.bf16.mxu0 %v3293_v17 }
 0x801   : > { %v1420_v11 = vpop.f32.mrb[4].mxu0  ;;  %2351 = vmatpush3.bf16.msra.mxu0 %v2554_v48 }
 0x802   : > { %v1426_v12 = vpack.c.bf16 %v1420_v11, %v1420_v11  ;;  %v2326_v13 = vpop.f32.mrb[5].mxu0  ;;  %2352 = vmatprep.subr.bf16.mxu0 %v3293_v17 }
 0x803   : > { %v1423_v14 = vpop.f32.mrb[6].mxu0 }
 0x804   : > { %v2327_v15 = vpop.f32.mrb[7].mxu0  ;;  %2331 = vmatmul.mubr.msk.bf16.vlgmr.msra.gmra.mrb[12].mxu1 %vm1206_vm3, %v1426_v12 }
 0x805   : > { %2344 = vmatprep.mubr.msk.bf16.mxu1 %vm3294_vm1, %v3293_v17  ;;  %2341 = vmatpush3.bf16.msra.mxu1 %v2551_v36 }
 0x806   : > { %2342 = vmatprep.subr.bf16.mxu1 %v3293_v17  ;;  %2353 = vmatpush3.bf16.msra.mxu0 %v2555_v49 }
 0x807   : > { %2354 = vmatprep.subr.bf16.mxu0 %v3293_v17 }
 0x809   : > { %2343 = vmatpush3.bf16.msra.mxu1 %v2552_v37 }
 0x80a   : > { %2355 = vmatpush3.bf16.msra.mxu0 %v2556_v50 }
 0x8cf   : > { %v1519_v16 = vpop.f32.mrb[8].mxu0 }
 0x8d0   : > { %v2338_v18 = vpop.f32.mrb[9].mxu0 }
 0x8d1   : > { %v1522_v20 = vpop.f32.mrb[10].mxu0 }
 0x8d2   : > { %v2339_v21 = vpop.f32.mrb[11].mxu0 }
 0x8d3   : > { %v2257_v21 = vld [vmem:[%s960_s3] ss:$0 sm:$0xff] }
 0x8d7   : > { %v1470_v22 = vpop.f32.mrb[12].mxu1 }
 0x8d8   : > { %v1520_v24 = vadd.f32 %v1519_v16, %v1470_v22  ;;  %v2332_v25 = vpop.f32.mrb[13].mxu1 }
 0x8d9   : > { %v1473_v26 = vpop.f32.mrb[14].mxu1 }
 0x8da   : > { %v1532_v27 = vadd.f32 %v2244_v23, %v1520_v24  ;;  %v2333_v28 = vpop.f32.mrb[15].mxu1  ;;  %v2258_v23 = vld [vmem:[%s4488_s13] ss:$0 sm:$0xff]  ;;  %v2571_v26 = vld [vmem:[#allocation23] sm:$0xff] (!%p2259_p10)  }
 0x8db   : > { %v2572_v28 = vld [vmem:[#allocation23 + $0x8] sm:$0xff] (!%p2259_p10)  }
 0x8dc   : > { %v1533_v29 = vadd.f32 %v1532_v27, %v4190_v19  ;;  %v3300_v27 = vmov (!%p2259_p10), 0.0  }
 0x8dd   : > { %2360 = vmatprep.subr.bf16.mxu0 (!%p2259_p10), %v3300_v27 }
 0x8de   : > { %v1536_v30 = vsel %vm1147_vm2, %v1533_v29, 0.0 }
 0x8df   : > { %1537 = vadd.xlane.f32.xlu1 %v1536_v30  ;;  %v1764_v30 = vld [vmem:[#allocation24] sm:$0x1] (!%p2259_p10) }
 0x96c   : > { %v1538_v31 = vpop.xlane.xlu1 %1537 }
 0x96d   : > { %v1540_v32 = vmul.f32 0.03125, %v1538_v31 }
 0x96f   : > { %v1541_v33 = vsub.f32 %v1533_v29, %v1540_v32 }
 0x971   : > { %v1542_v34 = vmul.f32 %v1541_v33, %v1541_v33 }
 0x973   : > { %v1543_v35 = vsel %vm1147_vm2, %v1542_v34, 0.0 }
 0x974   : > { %1544 = vadd.xlane.f32.xlu0 %v1543_v35 }
 0xa01   : > { %v1545_v19 = vpop.xlane.xlu0 %1544 }
 0xa02   : > { %v1546_v38 = vmul.f32 0.03125, %v1545_v19 }
 0xa04   : > { %v1547_v39 = vadd.f32 1e-12, %v1546_v38 }
 0xa06   : > { %2565 = vrsqrt.f32 %v1547_v39 }
 0xa10   : > { %v2566_v40 = vpop.eup %2565 }
 0xa11   : > { %v1549_v42 = vmul.f32 %v2566_v40, %v1541_v33 }
 0xa13   : > { %v1556_v44 = vmul.f32 %v2245_v41, %v1549_v42 }
 0xa15   : > { %v1563_v45 = vadd.f32 %v2246_v43, %v1556_v44 }
 0xa17   : > { %v1564_v46 = vpack.c.bf16 %v1563_v45, %v1563_v45 }
 0xa19   : > { %2345 = vmatmul.mubr.msk.bf16.vlgmr.msra.gmra.mrb[16].mxu1 %vm1147_vm2, %v1564_v46 }
 0xaec   : > { %v1625_v52 = vpop.f32.mrb[16].mxu1 }
 0xaed   : > { %v1626_v53 = vadd.f32 %v2247_v51, %v1625_v52  ;;  %v2346_v54 = vpop.f32.mrb[17].mxu1 }
 0xaee   : > { %v1628_v55 = vpop.f32.mrb[18].mxu1 }
 0xaef   : > { %v1632_v56 = vmul.f32 0.044715, %v1626_v53  ;;  %v2347_v57 = vpop.f32.mrb[19].mxu1  ;;  %v1631_v63 = vmul.f32 0.5, %v1626_v53 }
 0xaf1   : > { %v1633_v58 = vmul.f32 %v1632_v56, %v1626_v53 }
 0xaf3   : > { %v1634_v59 = vmul.f32 %v1633_v58, %v1626_v53 }
 0xaf5   : > { %v1635_v60 = vadd.f32 %v1634_v59, %v1626_v53 }
 0xaf7   : > { %v1636_v61 = vmul.f32 0.7978846, %v1635_v60 }
 0xaf9   : > { %2567 = vtanh.f32 %v1636_v61 }
 0xb03   : > { %v2568_v62 = vpop.eup %2567 }
 0xb04   : > { %v1638_v0 = vadd.f32 1.0, %v2568_v62 }
 0xb06   : > { %v1639_v1 = vmul.f32 %v1638_v0, %v1631_v63 }
 0xb08   : > { %v1640_v17 = vpack.c.bf16 %v1639_v1, %v1639_v1 }
 0xb0a   : > { %2357 = vmatmul.mubr.msk.bf16.vlgmr.msra.gmra.mrb[12].mxu0 %vm1680_vm6, %v1640_v17 }
 0xb0b   : > { %2361 = vmatpush3.bf16.msra.mxu0 (!%p2259_p10), %v2571_v26  ;;  %2364 = vmatprep.mubr.msk.bf16.mxu0 (!%p2259_p10), %vm3301_vm7, %v3300_v27 }
 0xb0c   : > { %2362 = vmatprep.subr.bf16.mxu0 (!%p2259_p10), %v3300_v27 }
 0xb0f   : > { %2363 = vmatpush3.bf16.msra.mxu0 (!%p2259_p10), %v2572_v28 }
 0xbdd   : > { %v1718_v3 = vpop.f32.mrb[12].mxu0 }
 0xbde   : > { %v1719_v4 = vadd.f32 %v2251_v2, %v1718_v3  ;;  %v2358_v5 = vpop.f32.mrb[13].mxu0 }
 0xbdf   : > { %v1721_v6 = vpop.f32.mrb[14].mxu0 }
 0xbe0   : > { %v2359_v7 = vpop.f32.mrb[15].mxu0  ;;  %v1724_v8 = vadd.f32 %v1719_v4, %v1563_v45 }
 0xbe2   : > { %v1727_v9 = vsel %vm1147_vm2, %v1724_v8, 0.0 }
 0xbe3   : > { %1728 = vadd.xlane.f32.xlu0 %v1727_v9 }
 0xc70   : > { %v1729_v10 = vpop.xlane.xlu0 %1728 }
 0xc71   : > { %v1730_v11 = vmul.f32 0.03125, %v1729_v10 }
 0xc73   : > { %v1731_v12 = vsub.f32 %v1724_v8, %v1730_v11 }
 0xc75   : > { %v1732_v13 = vmul.f32 %v1731_v12, %v1731_v12 }
 0xc77   : > { %v1733_v14 = vsel %vm1147_vm2, %v1732_v13, 0.0 }
 0xc78   : > { %1734 = vadd.xlane.f32.xlu1 %v1733_v14 }
 0xd05   : > { %v1735_v15 = vpop.xlane.xlu1 %1734 }
 0xd06   : > { %v1736_v16 = vmul.f32 0.03125, %v1735_v15 }
 0xd08   : > { %v1737_v18 = vadd.f32 1e-12, %v1736_v16 }
 0xd0a   : > { %2569 = vrsqrt.f32 %v1737_v18 }
 0xd14   : > { %v2570_v20 = vpop.eup %2569 }
 0xd15   : > { %v1739_v22 = vmul.f32 %v2570_v20, %v1731_v12  ;;  %1758 = sbr.rel (%p2259_p10) target bundleno = 3583 (0xdff), region = 172 }
 0xd17   : > { %v1746_v24 = vmul.f32 %v2257_v21, %v1739_v22 }
 0xd19   : > { %v1753_v25 = vadd.f32 %v2258_v23, %v1746_v24 }
 0xd1b   : > { %1754 = vst.msk [vmem:[#allocation2] sm:$0xff] %vm1147_vm2, %v1753_v25  ;;  %v1759_v29 = vpack.c.bf16 (!%p2259_p10), %v1753_v25, %v1753_v25 }
 0xd1d   : > { %2365 = vmatmul.mubr.msk.bf16.vlgmr.msra.gmra.mrb[0].mxu0 %vm1147_vm2, %v1759_v29 }
 0xdf0   : > { %v1814_v31 = vpop.f32.mrb[0].mxu0 }
 0xdf1   : > { %v1815_v32 = vadd.f32 %v1814_v31, %v1764_v30  ;;  %v2366_v33 = vpop.f32.mrb[1].mxu0 }
 0xdf2   : > { %v1817_v34 = vpop.f32.mrb[2].mxu0 }
 0xdf3   : > { %2573 = vtanh.f32 %v1815_v32  ;;  %v2367_v35 = vpop.f32.mrb[3].mxu0 }
 0xdfd   : > { %v2574_v36 = vpop.eup %2573 }
 0xdfe   : > { %1822 = vst.msk [vmem:[%s1083_s0] sm:$0x1] %vm1821_vm8, %v2574_v36 }
 0xdff PF: > { %s4490_s26 = sld [smem:[#allocation50_spill]]  ;;  %s4491_s3 = sld [smem:[#allocation58_spill]] }
 0xe00   : > { %s4492_s30 = sld [smem:[#allocation77_spill]]  ;;  %s1836_s5 = sshll.u32 %s1083_s0, 4  ;;  %s1837_s5 = int_to_ptr.vmem [resolvable:$true] %s1836_s5 }
 0xe01   : > { %s1824_s4 = scalar_lea.sflag [#allocation5], %s4046_s1  ;;  %s3079_s6 = scalar_lea.vmem %s1837_s5, 16 }
 0xe02   : > { %p3080_p1 = scmp.ne.s32.totalorder %s1837_s5, %s3079_s6  ;;  %s3302_s20 = smov [#allocation26]  }
 0xe03   : > { %s3083_s13 = sshll.u32 %s3302_s20, 4  ;;  %s3084_s13 = int_to_ptr.vmem [resolvable:$false] %s3083_s13 }
 0xe04   : > { %s3085_s27 = scalar_lea.vmem %s3084_s13, 32  ;;  %p3086_p12 = scmp.lt.s32.totalorder %s1837_s5, %s3084_s13 }
 0xe05   : > { %s2263_s28 = sshll.u32 %s4490_s26, 4  ;;  %p4494_p3 = scmp.ne.s32.totalorder %s4491_s3, 0 }
 0xe06   : > { %s4493_s8 = smov %s4492_s30  ;;  %s4280_s7 = scalar_lea.hbm %s4492_s30, %s2263_s28 }
 0xe07   : > { %p3081_p13 = pnand %p3080_p1, %p4494_p3  ;;  %p3087_p0 = scmp.lt.s32.totalorder %s3085_s27, %s3079_s6 }
 0xe09   : > { %p3082_p2 = pneg %p3081_p13  ;;  %p3088_p4 = por %p3087_p0, %p3086_p12 }
 0xe0b   : > { %p3089_p11 = pnand %p3088_p4, %p3082_p2 }
 0xe0d   : > { %3092 = shalt.err (!%p3089_p11)
}
 0xe0e   : > { %s3093_s1 = scalar_lea.hbm %s4280_s7, 16  ;;  %s3097_s28 = scalar_lea.hbm %s4493_s8, 32 }
 0xe0f   : > { %p3094_p6 = scmp.ne.s32.totalorder %s4280_s7, %s3093_s1  ;;  %p3098_p7 = scmp.lt.u32.totalorder %s4280_s7, %s4493_s8 }
 0xe10   : > { %p3099_p9 = scmp.lt.u32.totalorder %s3097_s28, %s3093_s1  ;;  %p3101_p1 = scmp.lt.u32.totalorder %s3093_s1, %s4280_s7 }
 0xe11   : > { %p3095_p5 = pnand %p3094_p6, %p4494_p3 }
 0xe12   : > { %p3100_p10 = por %p3099_p9, %p3098_p7 }
 0xe13   : > { %p3096_p8 = pneg %p3095_p5 }
 0xe14   : > { %p3102_p13 = por %p3101_p1, %p3100_p10 }
 0xe16   : > { %p3103_p2 = pnand %p3102_p13, %p3096_p8 }
 0xe18   : > { %3106 = shalt.err (!%p3103_p2)
}
 0xe19   : > { %2412 = dma.vmem_to_hbm [thread:$0]  (%p4494_p3), %s1837_s5, 16, %s4280_s7, %s1824_s4  }
 0xe1a PF: > { %s4495_s30 = sld [smem:[#allocation47_spill]]  ;;  %s4496_s6 = sld [smem:[#allocation59_spill]] }
 0xe1b   : > { %p2439_p12 = scmp.ge.s32.totalorder %s3269_s2, 2 }
 0xe20   : > { %s1848_s20 = sand.u32 1, %s4495_s30   ;;  %p4497_p0 = scmp.ne.s32.totalorder %s4496_s6, 0 }
 0xe21   : > { %s1849_s13 = scalar_lea.sflag [#allocation5], %s1848_s20 }
 0xe22   : > { %p2428_p4 = pnand %p2439_p12, %p4497_p0 }
 0xe24   : > { %3224 = dma.done.wait (!%p2428_p4), %s1849_s13, 16  }
 0xe25   : > { %3226 = vsyncadd (!%p2428_p4), %s1849_s13, 4294967280  ;;  %s39_s2 = sadd.s32 1, %s3269_s2   ;;  %s4498_s27 = sld [smem:[#allocation46_spill]] }
 0xe26   : > { %p36_p11 = scmp.ge.s32.totalorder %s39_s2, 6   ;;  %s4499_s1 = sld [smem:[#allocation55_spill]] }
 0xe27   : > { %s4500_s30 = sld [smem:[#allocation48_spill]]  ;;  %s4501_s3 = sld [smem:[#allocation56_spill]] }
 0xe28   : > { %s4502_s7 = sld [smem:[#allocation52_spill]]  ;;  %s4503_s5 = sld [smem:[#allocation53_spill]] }
 0xe29   : > { %s4504_s28 = smov %s3237_s29  ;;  %s4506_s0 = smov %s3249_s19 }
 0xe2a   : > { %s4509_s20 = smov %s3265_s22  ;;  %38 = sbr.rel (!%p36_p11) target bundleno = 31 (0x1f), region = 306 }
 0xe2c   : > { %s4505_s29 = smov %s4499_s1  ;;  %s4508_s1 = smov %s3261_s21 }
 0xe2d   : > { %s4507_s19 = smov %s4501_s3 }
 0xe2e   : > { %s4510_s21 = smov %s4502_s7  ;;  %s4511_s22 = smov %s4503_s5 }
 0xe31   :  { %1853 = vsyncpa [#allocation4], 1 }
 0xe32   :  { %1855 = vsyncpa [#allocation4 + $0x1], 1 }
 0xe33   :  { %1856 = vsyncpa [#allocation7], 1 }
 0xe34   :  { %1858 = vsyncpa [#allocation7 + $0x1], 1 }
 0xe35   :  { %1859 = vsyncpa [#allocation10], 1 }
 0xe36   :  { %1860 = vsyncpa [#allocation25], 1 }
 0xe37   :  { %1861 = vsyncpa [#allocation5], 1 }
 0xe38   :  { %1863 = vsyncpa [#allocation5 + $0x1], 1 }

</bundles_post_ra>
